<compile_context>
chip_gen: v5e
topology: v5e:2x2
jax: 0.10.0
libtpu: 0.0.40
codegen_flags: <defaults>
</compile_context>

<pallas_src>
import math
import functools

import jax
import jax.numpy as jnp
from jax.experimental import pallas as pl
from jax.experimental.pallas import tpu as pltpu

# ----------------------------- hyper-parameters ------------------------------
N_NODES = 16          # number of graph nodes
FEATURE_SIZE = 3      # forward() concatenates 3 per-node scalars
EMBEDDING_SIZE = 32
N_HEADS = 4
N_LAYERS = 3          # QNetworkSwapGNN default passes n_layers=3
L_TOTAL = 1 + N_LAYERS
DENSE_NEURONS = 128
NUM_LOCATIONS = 15
OUT_DIM = 2           # reduce_action_space=False -> out_dim = 2
HC = EMBEDDING_SIZE * N_HEADS     # 128 = heads * emb (lane-dense)
HEAD_PAD = DENSE_NEURONS          # every kernel output padded to 128 lanes


# ------------------------------ fused Pallas kernel --------------------------
def fused_qnet_kernel(x0_ref, adj_ref, ea_ref, wproj_ref, wtT_ref, slab_ref,
                      hw_ref, hb_ref, q_ref, emb_ref, *, n_blocks, heads, emb):
    """All conv blocks + MLP head for one graph (one grid step = one graph)."""
    n = x0_ref.shape[0]
    hc = heads * emb
    adj = adj_ref[...]                                 # (N, N)
    ea = ea_ref[...]                                   # (N, N)
    adj_b = adj[None]                                  # (1, N, N) broadcast over heads
    ea_b = ea[None]
    neg_b = jnp.where(adj > 0, 0.0, -1e30)[None]       # hoisted edge mask (additive)
    scale = 1.0 / math.sqrt(emb)

    def heads_view(m):                                 # (N, H*E) -> (H, N, E)
        return jnp.transpose(m.reshape(n, heads, emb), (1, 0, 2))

    def layer_body(l, x):
        # ---- single lane-dense projection for q | k | v | skip: (N,32)@(32,512) ----
        slab = slab_ref[l]                             # (8, 512) per-layer vector slab
        proj = jnp.dot(x, wproj_ref[l],
                       preferred_element_type=jnp.float32) + slab[0:1, :]   # + biases
        q = heads_view(proj[:, 0 * hc:1 * hc])
        k = heads_view(proj[:, 1 * hc:2 * hc])
        v = heads_view(proj[:, 2 * hc:3 * hc])
        x_r = proj[:, 3 * hc:4 * hc]                   # flat (N, H*E) skip branch

        wbo = slab[1:2, 0:hc]                          # wbeta[:hc]    + wbeta[2hc:]
        wbx = slab[1:2, hc:2 * hc]                     # wbeta[hc:2hc] - wbeta[2hc:]
        bt = slab[2:3, 0:emb]
        gamma = slab[2:3, emb:2 * emb]
        betab = slab[2:3, 2 * emb:3 * emb]
        we_hm = slab[3:3 + heads, 0:emb][:, None, :]   # lin_edge weight, (H, 1, E)

        # score[h,i,j] = <q_hi, k_hj + ea_ij * we_h> / sqrt(E)  (edge-attr decomposition)
        base = jax.lax.dot_general(q, k, (((2,), (2,)), ((0,), (0,))),
                                   preferred_element_type=jnp.float32)      # (H,N,N)
        qe = jnp.sum(q * we_hm, axis=2, keepdims=True)                       # (H,N,1)
        score = (base + ea_b * qe) * scale + neg_b
        m = jnp.max(score, axis=2, keepdims=True)
        # *adj keeps isolated-node rows exactly zero (matches PyG aggregation)
        p = jnp.exp(score - m) * adj_b
        inv = pl.reciprocal(jnp.sum(p, axis=2, keepdims=True) + 1e-16, approx=True)
        alpha = p * inv                                                      # (H,N,N)

        # out_hi = sum_j alpha_hij * (v_hj + ea_ij * we_h)
        o = jax.lax.dot_general(alpha, v, (((2,), (1,)), ((0,), (0,))),
                                preferred_element_type=jnp.float32)          # (H,N,E)
        coef = jnp.sum(alpha * ea_b, axis=2, keepdims=True)                  # (H,N,1)
        o = o + coef * we_hm
        o_flat = jnp.transpose(o, (1, 0, 2)).reshape(n, hc)                  # (N, H*E)

        # beta gate: sigmoid(o.w1 + x_r.w2 + (o-x_r).w3) = sigmoid(o.wbo + x_r.wbx)
        gate = jax.nn.sigmoid(jnp.sum(o_flat * wbo + x_r * wbx,
                                      axis=1, keepdims=True))                # (N, 1)
        o_flat = gate * x_r + (1.0 - gate) * o_flat

        # transf Linear(H*E -> E) as one 128-contraction matmul (A @ B^T), then ReLU
        hdd = jax.lax.dot_general(o_flat, wtT_ref[l], (((1,), (1,)), ((), ())),
                                  preferred_element_type=jnp.float32) + bt   # (N, E)
        hdd = jnp.maximum(hdd, 0.0)

        # BatchNorm1d, training-mode batch statistics (biased variance), eps=1e-5
        mu = jnp.mean(hdd, axis=0, keepdims=True)
        var = jnp.mean((hdd - mu) ** 2, axis=0, keepdims=True)
        return (hdd - mu) * jax.lax.rsqrt(var + 1e-5) * gamma + betab

    x = jax.lax.fori_loop(0, n_blocks, layer_body, x0_ref[...])              # (N, 32)

    # lane-dense store of the node embedding (zero-padded 32 -> 128 lanes)
    emb_ref[...] = jnp.concatenate(
        [x, jnp.zeros((n, emb_ref.shape[-1] - emb), jnp.float32)], axis=1)

    # node_embedding_transformation MLP: 32 -> 128 -> 64 -> 32 -> 2 (padded to 128)
    hb = hb_ref[...]                                                          # (4, 128)
    h = jnp.maximum(jnp.dot(x, hw_ref[0, :emb, :],
                            preferred_element_type=jnp.float32) + hb[0:1], 0.0)
    h = jnp.maximum(jnp.dot(h, hw_ref[1],
                            preferred_element_type=jnp.float32) + hb[1:2], 0.0)
    h = jnp.maximum(jnp.dot(h, hw_ref[2],
                            preferred_element_type=jnp.float32) + hb[2:3], 0.0)
    q_ref[...] = jnp.dot(h, hw_ref[3],
                         preferred_element_type=jnp.float32) + hb[3:4]        # (N, 128)


def fused_forward(x0, adj, ea, params):
    """x0: (B,N,32), adj/ea: (B,N,N).  Returns (q_pad, emb_pad), each (B,N,128)."""
    B, n, _ = x0.shape
    kern = functools.partial(fused_qnet_kernel, n_blocks=L_TOTAL,
                             heads=N_HEADS, emb=EMBEDDING_SIZE)
    wproj, wtT, slab = params["wproj"], params["wtT"], params["slab"]
    hw, hb = params["hw"], params["hb"]

    def graph_spec(shape):          # per-graph tile, squeezed batch dim
        return pl.BlockSpec((None,) + shape, lambda b: (b,) + (0,) * len(shape))

    def full_spec(a):               # weights: resident, constant index map
        return pl.BlockSpec(a.shape, lambda b, _nd=a.ndim: (0,) * _nd)

    return pl.pallas_call(
        kern,
        grid=(B,),
        out_shape=(jax.ShapeDtypeStruct((B, n, HEAD_PAD), jnp.float32),
                   jax.ShapeDtypeStruct((B, n, HEAD_PAD), jnp.float32)),
        in_specs=[graph_spec((n, EMBEDDING_SIZE)),
                  graph_spec((n, n)),
                  graph_spec((n, n)),
                  full_spec(wproj), full_spec(wtT), full_spec(slab),
                  full_spec(hw), full_spec(hb)],
        out_specs=(graph_spec((n, HEAD_PAD)), graph_spec((n, HEAD_PAD))),
        compiler_params=pltpu.CompilerParams(dimension_semantics=("parallel",)),
    )(x0, adj, ea, wproj, wtT, slab, hw, hb)


# ---------------------------- deterministic params ---------------------------
def _linear(key, fin, fout):
    k1, k2 = jax.random.split(key)
    w = jax.random.normal(k1, (fin, fout), jnp.float32) / math.sqrt(fin)
    b = 0.01 * jax.random.normal(k2, (fout,), jnp.float32)
    return w, b


def _init_conv_block(key, fin, emb, heads):
    """One TransformerConv(beta=True)+Linear+BN block, packed lane-dense."""
    hc = emb * heads
    ks = jax.random.split(key, 9)
    wq, bq = _linear(ks[0], fin, hc)
    wk, bk = _linear(ks[1], fin, hc)
    wv, bv = _linear(ks[2], fin, hc)
    we = 0.3 * jax.random.normal(ks[3], (hc,), jnp.float32)            # lin_edge, no bias
    wskip, bskip = _linear(ks[4], fin, hc)
    wbeta = jax.random.normal(ks[5], (3 * hc,), jnp.float32) / math.sqrt(3 * hc)
    wt, bt = _linear(ks[6], hc, emb)
    gamma = 1.0 + 0.1 * jax.random.normal(ks[7], (emb,), jnp.float32)
    beta = 0.1 * jax.random.normal(ks[8], (emb,), jnp.float32)

    fin_pad = emb                                                       # zero-pad fin -> 32

    def pad_rows(w):
        return jnp.zeros((fin_pad, hc), jnp.float32).at[:fin].set(w)

    # [Wq | Wk | Wv | Wskip] as ONE lane-dense (32, 512) projection slab
    wproj = jnp.concatenate([pad_rows(wq), pad_rows(wk),
                             pad_rows(wv), pad_rows(wskip)], axis=1)
    wt_t = wt.T                                                         # (32, 128) lane-dense

    wbo = wbeta[:hc] + wbeta[2 * hc:]                                   # gate decomposition
    wbx = wbeta[hc:2 * hc] - wbeta[2 * hc:]
    slab = jnp.zeros((8, 4 * hc), jnp.float32)
    slab = slab.at[0].set(jnp.concatenate([bq, bk, bv, bskip]))         # row 0: proj biases
    slab = slab.at[1, 0:hc].set(wbo).at[1, hc:2 * hc].set(wbx)          # row 1: gate weights
    slab = slab.at[2, 0:emb].set(bt)                                    # row 2: bt|gamma|beta
    slab = slab.at[2, emb:2 * emb].set(gamma)
    slab = slab.at[2, 2 * emb:3 * emb].set(beta)
    slab = slab.at[3:3 + heads, 0:emb].set(we.reshape(heads, emb))      # rows 3..6: lin_edge
    return wproj, wt_t, slab


def init_params(key):
    assert 3 + N_HEADS <= 8, "slab packing needs heads <= 5"
    ks = jax.random.split(key, 2 + N_LAYERS)
    blocks = [_init_conv_block(ks[0], FEATURE_SIZE, EMBEDDING_SIZE, N_HEADS)]
    for l in range(N_LAYERS):
        blocks.append(_init_conv_block(ks[1 + l], EMBEDDING_SIZE, EMBEDDING_SIZE, N_HEADS))
    wproj_all = jnp.stack([b[0] for b in blocks], axis=0)               # (L, 32, 512)
    wtT_all = jnp.stack([b[1] for b in blocks], axis=0)                 # (L, 32, 128)
    slab_all = jnp.stack([b[2] for b in blocks], axis=0)                # (L, 8, 512)

    hk = jax.random.split(ks[-1], 4)
    w1, b1 = _linear(hk[0], EMBEDDING_SIZE, DENSE_NEURONS)
    w2, b2 = _linear(hk[1], DENSE_NEURONS, DENSE_NEURONS // 2)
    w3, b3 = _linear(hk[2], DENSE_NEURONS // 2, DENSE_NEURONS // 4)
    w4, b4 = _linear(hk[3], DENSE_NEURONS // 4, OUT_DIM)
    hw = jnp.zeros((4, DENSE_NEURONS, DENSE_NEURONS), jnp.float32)
    hw = hw.at[0, :EMBEDDING_SIZE, :].set(w1)
    hw = hw.at[1, :, :DENSE_NEURONS // 2].set(w2)
    hw = hw.at[2, :DENSE_NEURONS // 2, :DENSE_NEURONS // 4].set(w3)
    hw = hw.at[3, :DENSE_NEURONS // 4, :OUT_DIM].set(w4)
    hb = jnp.zeros((4, DENSE_NEURONS), jnp.float32)
    hb = hb.at[0, :].set(b1).at[1, :DENSE_NEURONS // 2].set(b2)
    hb = hb.at[2, :DENSE_NEURONS // 4].set(b3).at[3, :OUT_DIM].set(b4)
    return {"wproj": wproj_all, "wtT": wtT_all, "slab": slab_all, "hw": hw, "hb": hb}


# --------------------------------- forward -----------------------------------
def construct_masks(active_mask):
    """Exact semantics of QNetworkSwapGNN.construct_masks (entries are 0 or -inf)."""
    mask = active_mask
    head = mask[:NUM_LOCATIONS]
    rm_head = jnp.where(head == 0, -jnp.inf, head)
    rm_head = jnp.where(jnp.isneginf(head), 0.0, rm_head)
    remove_mask = jnp.concatenate([rm_head, mask[NUM_LOCATIONS:]])
    return mask, remove_mask


@jax.jit
def qnetwork_forward(node_type, requests, update_step, adj, ea, active_mask, params):
    # x = cat([type, requests, update_step], dim=1) -> (N, 3), zero-padded to (N, 32)
    x = jnp.stack([node_type, requests, update_step], axis=1).astype(jnp.float32)
    n = x.shape[0]
    x0 = jnp.zeros((n, EMBEDDING_SIZE), jnp.float32).at[:, :FEATURE_SIZE].set(x)

    # fused: NetworkGraphEmbeddingConstructor + node_embedding_transformation (B=1)
    q_pad, emb_pad = fused_forward(x0[None], adj[None], ea[None], params)
    q_single = q_pad[0, :, :OUT_DIM]                                   # (N, 2)
    node_emb = emb_pad[0, :, :EMBEDDING_SIZE]                          # (N, 32)

    # mask / argmax post-processing (reduce_action_space=False branch), plain-JAX glue
    mask, remove_mask = construct_masks(active_mask)
    remove_action = jnp.argmax(q_single[:, 0] + remove_mask)
    mask = mask.at[remove_action].set(0.0)
    add_mask = jnp.stack([remove_mask, mask], axis=1)                  # (N, 2)
    q_values = q_single + add_mask
    return q_values, node_emb


# ----------------------------------- main -------------------------------------
if __name__ == "__main__":
    key = jax.random.PRNGKey(0)
    kp, kd = jax.random.split(key)
    params = init_params(kp)

    # deterministic small graph: each node i receives edges from (i-1)%N and (i+1)%N
    N = N_NODES
    idx = jnp.arange(N)
    adj = jnp.zeros((N, N), jnp.float32)
    adj = adj.at[idx, (idx - 1) % N].set(1.0)
    adj = adj.at[idx, (idx + 1) % N].set(1.0)
    latency = 0.5 + jax.random.uniform(jax.random.fold_in(kd, 1), (N, N), jnp.float32)
    ea = latency * adj                                                 # edge attr, 0 where no edge

    node_type = jnp.asarray(jax.random.randint(jax.random.fold_in(kd, 2), (N,), 0, 3), jnp.float32)
    requests = jax.random.uniform(jax.random.fold_in(kd, 3), (N,), jnp.float32)
    update_step = jnp.asarray(jax.random.randint(jax.random.fold_in(kd, 4), (N,), 0, 10), jnp.float32)

    # active_mask: entries are 0 or -inf (first NUM_LOCATIONS get flipped in remove_mask)
    am_pattern = jnp.asarray(jax.random.bernoulli(jax.random.fold_in(kd, 5), 0.6, (NUM_LOCATIONS,)))
    active_mask = jnp.concatenate(
        [jnp.where(am_pattern, 0.0, -jnp.inf), jnp.zeros((N - NUM_LOCATIONS,), jnp.float32)]
    )

    # TODO(synk): reduce_action_space=True path calls _reduce_graph which raises
    # NotImplementedError in the reference; only the reduce_action_space=False path is implemented.
    q_values, node_emb = qnetwork_forward(node_type, requests, update_step,
                                          adj, ea, active_mask, params)
    jax.block_until_ready(q_values)
    jax.block_until_ready(node_emb)
    assert q_values.shape == (N, OUT_DIM) and node_emb.shape == (N, EMBEDDING_SIZE)
    assert bool(jnp.all(jnp.isfinite(node_emb)))
    assert not bool(jnp.any(jnp.isnan(q_values)))
    print("KERNEL_OK")
</pallas_src>

<mosaic_0001>
module attributes {stable_mosaic.version = 11 : i64} {
  func.func @fused_qnet_kernel(%arg0: i32, %arg1: memref<1x16x32xf32, #tpu.memory_space<vmem>>, %arg2: memref<1x16x16xf32, #tpu.memory_space<vmem>>, %arg3: memref<1x16x16xf32, #tpu.memory_space<vmem>>, %arg4: memref<4x32x512xf32, #tpu.memory_space<vmem>>, %arg5: memref<4x32x128xf32, #tpu.memory_space<vmem>>, %arg6: memref<4x8x512xf32, #tpu.memory_space<vmem>>, %arg7: memref<4x128x128xf32, #tpu.memory_space<vmem>>, %arg8: memref<4x128xf32, #tpu.memory_space<vmem>>, %arg9: memref<1x16x128xf32, #tpu.memory_space<vmem>>, %arg10: memref<1x16x128xf32, #tpu.memory_space<vmem>>) attributes {dimension_semantics = [#tpu.dimension_semantics<parallel>], iteration_bounds = array<i64: 1>, scalar_prefetch = 0 : i64, scratch_operands = 0 : i64, tpu.core_type = #tpu.core_type<tc>, window_params = [{transform_indices = @transform_0, window_bounds = array<i64: 1, 16, 32>}, {transform_indices = @transform_1, window_bounds = array<i64: 1, 16, 16>}, {transform_indices = @transform_2, window_bounds = array<i64: 1, 16, 16>}, {pipeline_mode = #tpu.pipeline_mode<synchronous>, transform_indices = @transform_3, window_bounds = array<i64: 4, 32, 512>}, {pipeline_mode = #tpu.pipeline_mode<synchronous>, transform_indices = @transform_4, window_bounds = array<i64: 4, 32, 128>}, {pipeline_mode = #tpu.pipeline_mode<synchronous>, transform_indices = @transform_5, window_bounds = array<i64: 4, 8, 512>}, {pipeline_mode = #tpu.pipeline_mode<synchronous>, transform_indices = @transform_6, window_bounds = array<i64: 4, 128, 128>}, {pipeline_mode = #tpu.pipeline_mode<synchronous>, transform_indices = @transform_7, window_bounds = array<i64: 4, 128>}, {transform_indices = @transform_8, window_bounds = array<i64: 1, 16, 128>}, {transform_indices = @transform_9, window_bounds = array<i64: 1, 16, 128>}]} {
    %c0 = arith.constant 0 : index
    %c0_0 = arith.constant 0 : index
    %c0_1 = arith.constant 0 : index
    %0 = vector.load %arg2[%c0, %c0_0, %c0_1] : memref<1x16x16xf32, #tpu.memory_space<vmem>>, vector<1x16x16xf32>
    %1 = vector.shape_cast %0 : vector<1x16x16xf32> to vector<16x16xf32>
    %c0_2 = arith.constant 0 : index
    %c0_3 = arith.constant 0 : index
    %c0_4 = arith.constant 0 : index
    %2 = vector.load %arg3[%c0_2, %c0_3, %c0_4] : memref<1x16x16xf32, #tpu.memory_space<vmem>>, vector<1x16x16xf32>
    %3 = vector.shape_cast %2 : vector<1x16x16xf32> to vector<16x16xf32>
    %4 = vector.shape_cast %1 : vector<16x16xf32> to vector<1x16x16xf32>
    %5 = vector.shape_cast %3 : vector<16x16xf32> to vector<1x16x16xf32>
    %cst = arith.constant 0.000000e+00 : f32
    %6 = vector.broadcast %cst : f32 to vector<16x16xf32>
    %7 = arith.cmpf ogt, %1, %6 : vector<16x16xf32>
    %cst_5 = arith.constant 0.000000e+00 : f32
    %cst_6 = arith.constant -1.000000e+30 : f32
    %8 = vector.broadcast %cst_5 : f32 to vector<16x16xf32>
    %9 = vector.broadcast %cst_6 : f32 to vector<16x16xf32>
    %10 = arith.select %7, %8, %9 : vector<16x16xi1>, vector<16x16xf32>
    %11 = vector.shape_cast %10 : vector<16x16xf32> to vector<1x16x16xf32>
    %c0_7 = arith.constant 0 : index
    %c0_8 = arith.constant 0 : index
    %c0_9 = arith.constant 0 : index
    %12 = vector.load %arg1[%c0_7, %c0_8, %c0_9] : memref<1x16x32xf32, #tpu.memory_space<vmem>>, vector<1x16x32xf32>
    %13 = vector.shape_cast %12 : vector<1x16x32xf32> to vector<16x32xf32>
    %c0_i32 = arith.constant 0 : i32
    %c4_i32 = arith.constant 4 : i32
    %14 = arith.addi %c0_i32, %c4_i32 : i32
    %c1_i32 = arith.constant 1 : i32
    %15 = scf.for %arg11 = %c0_i32 to %14 step %c1_i32 iter_args(%arg12 = %13) -> (vector<16x32xf32>)  : i32 {
      %55 = arith.index_cast %arg11 : i32 to index
      %c0_36 = arith.constant 0 : index
      %c0_37 = arith.constant 0 : index
      %56 = vector.load %arg6[%55, %c0_36, %c0_37] : memref<4x8x512xf32, #tpu.memory_space<vmem>>, vector<1x8x512xf32>
      %57 = vector.shape_cast %56 : vector<1x8x512xf32> to vector<8x512xf32>
      %58 = arith.index_cast %arg11 : i32 to index
      %c0_38 = arith.constant 0 : index
      %c0_39 = arith.constant 0 : index
      %59 = vector.load %arg4[%58, %c0_38, %c0_39] : memref<4x32x512xf32, #tpu.memory_space<vmem>>, vector<1x32x512xf32>
      %60 = vector.shape_cast %59 : vector<1x32x512xf32> to vector<32x512xf32>
      %cst_40 = arith.constant dense<0.000000e+00> : vector<16x512xf32>
      %61 = tpu.matmul %arg12, %60, %cst_40 {dimension_numbers = #tpu.dot_dimension_numbers<[1], [0], [0], [1], [0, 0, 1, 1], [], []>} : vector<16x32xf32>, vector<32x512xf32>, vector<16x512xf32> -> vector<16x512xf32>
      %62 = vector.extract_strided_slice %57 {offsets = [0, 0], sizes = [1, 512], strides = [1, 1]} : vector<8x512xf32> to vector<1x512xf32>
      %63 = vector.broadcast %62 : vector<1x512xf32> to vector<16x512xf32>
      %64 = arith.addf %61, %63 : vector<16x512xf32>
      %65 = vector.extract_strided_slice %64 {offsets = [0, 0], sizes = [16, 128], strides = [1, 1]} : vector<16x512xf32> to vector<16x128xf32>
      %66 = vector.shape_cast %65 : vector<16x128xf32> to vector<16x4x32xf32>
      %67 = tpu.transpose %66, [1, 0, 2] : vector<16x4x32xf32> -> vector<4x16x32xf32>
      %68 = vector.extract_strided_slice %64 {offsets = [0, 128], sizes = [16, 128], strides = [1, 1]} : vector<16x512xf32> to vector<16x128xf32>
      %69 = vector.shape_cast %68 : vector<16x128xf32> to vector<16x4x32xf32>
      %70 = tpu.transpose %69, [1, 0, 2] : vector<16x4x32xf32> -> vector<4x16x32xf32>
      %71 = vector.extract_strided_slice %64 {offsets = [0, 256], sizes = [16, 128], strides = [1, 1]} : vector<16x512xf32> to vector<16x128xf32>
      %72 = vector.shape_cast %71 : vector<16x128xf32> to vector<16x4x32xf32>
      %73 = tpu.transpose %72, [1, 0, 2] : vector<16x4x32xf32> -> vector<4x16x32xf32>
      %74 = vector.extract_strided_slice %64 {offsets = [0, 384], sizes = [16, 128], strides = [1, 1]} : vector<16x512xf32> to vector<16x128xf32>
      %75 = vector.extract_strided_slice %57 {offsets = [1, 0], sizes = [1, 128], strides = [1, 1]} : vector<8x512xf32> to vector<1x128xf32>
      %76 = vector.extract_strided_slice %57 {offsets = [1, 128], sizes = [1, 128], strides = [1, 1]} : vector<8x512xf32> to vector<1x128xf32>
      %77 = vector.extract_strided_slice %57 {offsets = [2, 0], sizes = [1, 32], strides = [1, 1]} : vector<8x512xf32> to vector<1x32xf32>
      %78 = vector.extract_strided_slice %57 {offsets = [2, 32], sizes = [1, 32], strides = [1, 1]} : vector<8x512xf32> to vector<1x32xf32>
      %79 = vector.extract_strided_slice %57 {offsets = [2, 64], sizes = [1, 32], strides = [1, 1]} : vector<8x512xf32> to vector<1x32xf32>
      %80 = vector.extract_strided_slice %57 {offsets = [3, 0], sizes = [4, 32], strides = [1, 1]} : vector<8x512xf32> to vector<4x32xf32>
      %81 = vector.shape_cast %80 : vector<4x32xf32> to vector<4x1x32xf32>
      %cst_41 = arith.constant dense<0.000000e+00> : vector<4x16x16xf32>
      %82 = tpu.matmul %67, %70, %cst_41 {dimension_numbers = #tpu.dot_dimension_numbers<[2], [2], [1], [1], [0, 0, 0, 1, 1, 1], [0], [0]>} : vector<4x16x32xf32>, vector<4x16x32xf32>, vector<4x16x16xf32> -> vector<4x16x16xf32>
      %83 = vector.broadcast %81 : vector<4x1x32xf32> to vector<4x16x32xf32>
      %84 = arith.mulf %67, %83 : vector<4x16x32xf32>
      %cst_42 = arith.constant dense<0.000000e+00> : vector<4x16xf32>
      %85 = vector.multi_reduction <add>, %84, %cst_42 [2] : vector<4x16x32xf32> to vector<4x16xf32>
      %86 = vector.shape_cast %85 : vector<4x16xf32> to vector<4x16x1xf32>
      %87 = vector.broadcast %5 : vector<1x16x16xf32> to vector<4x16x16xf32>
      %88 = vector.broadcast %86 : vector<4x16x1xf32> to vector<4x16x16xf32>
      %89 = arith.mulf %87, %88 : vector<4x16x16xf32>
      %90 = arith.addf %82, %89 : vector<4x16x16xf32>
      %cst_43 = arith.constant 0.176776692 : f32
      %91 = vector.broadcast %cst_43 : f32 to vector<4x16x16xf32>
      %92 = arith.mulf %90, %91 : vector<4x16x16xf32>
      %93 = vector.broadcast %11 : vector<1x16x16xf32> to vector<4x16x16xf32>
      %94 = arith.addf %92, %93 : vector<4x16x16xf32>
      %cst_44 = arith.constant dense<0xFF800000> : vector<4x16xf32>
      %95 = vector.multi_reduction <maximumf>, %94, %cst_44 [2] : vector<4x16x16xf32> to vector<4x16xf32>
      %96 = vector.shape_cast %95 : vector<4x16xf32> to vector<4x16x1xf32>
      %97 = vector.broadcast %96 : vector<4x16x1xf32> to vector<4x16x16xf32>
      %98 = arith.subf %94, %97 : vector<4x16x16xf32>
      %99 = math.exp %98 : vector<4x16x16xf32>
      %100 = vector.broadcast %4 : vector<1x16x16xf32> to vector<4x16x16xf32>
      %101 = arith.mulf %99, %100 : vector<4x16x16xf32>
      %cst_45 = arith.constant dense<0.000000e+00> : vector<4x16xf32>
      %102 = vector.multi_reduction <add>, %101, %cst_45 [2] : vector<4x16x16xf32> to vector<4x16xf32>
      %103 = vector.shape_cast %102 : vector<4x16xf32> to vector<4x16x1xf32>
      %cst_46 = arith.constant 1.000000e-16 : f32
      %104 = vector.broadcast %cst_46 : f32 to vector<4x16x1xf32>
      %105 = arith.addf %103, %104 : vector<4x16x1xf32>
      %106 = tpu.reciprocal %105 {approx = true} : vector<4x16x1xf32> -> vector<4x16x1xf32>
      %107 = vector.broadcast %106 : vector<4x16x1xf32> to vector<4x16x16xf32>
      %108 = arith.mulf %101, %107 : vector<4x16x16xf32>
      %cst_47 = arith.constant dense<0.000000e+00> : vector<4x16x32xf32>
      %109 = tpu.matmul %108, %73, %cst_47 {dimension_numbers = #tpu.dot_dimension_numbers<[2], [1], [1], [2], [0, 0, 0, 1, 1, 2], [0], [0]>} : vector<4x16x16xf32>, vector<4x16x32xf32>, vector<4x16x32xf32> -> vector<4x16x32xf32>
      %110 = vector.broadcast %5 : vector<1x16x16xf32> to vector<4x16x16xf32>
      %111 = arith.mulf %108, %110 : vector<4x16x16xf32>
      %cst_48 = arith.constant dense<0.000000e+00> : vector<4x16xf32>
      %112 = vector.multi_reduction <add>, %111, %cst_48 [2] : vector<4x16x16xf32> to vector<4x16xf32>
      %113 = vector.shape_cast %112 : vector<4x16xf32> to vector<4x16x1xf32>
      %114 = vector.broadcast %113 : vector<4x16x1xf32> to vector<4x16x32xf32>
      %115 = vector.broadcast %81 : vector<4x1x32xf32> to vector<4x16x32xf32>
      %116 = arith.mulf %114, %115 : vector<4x16x32xf32>
      %117 = arith.addf %109, %116 : vector<4x16x32xf32>
      %118 = tpu.transpose %117, [1, 0, 2] : vector<4x16x32xf32> -> vector<16x4x32xf32>
      %119 = vector.shape_cast %118 : vector<16x4x32xf32> to vector<16x128xf32>
      %120 = vector.broadcast %75 : vector<1x128xf32> to vector<16x128xf32>
      %121 = arith.mulf %119, %120 : vector<16x128xf32>
      %122 = vector.broadcast %76 : vector<1x128xf32> to vector<16x128xf32>
      %123 = arith.mulf %74, %122 : vector<16x128xf32>
      %124 = arith.addf %121, %123 : vector<16x128xf32>
      %cst_49 = arith.constant dense<0.000000e+00> : vector<16xf32>
      %125 = vector.multi_reduction <add>, %124, %cst_49 [1] : vector<16x128xf32> to vector<16xf32>
      %126 = vector.shape_cast %125 : vector<16xf32> to vector<16x1xf32>
      %127 = arith.negf %126 : vector<16x1xf32>
      %128 = math.exp %127 : vector<16x1xf32>
      %cst_50 = arith.constant 1.000000e+00 : f32
      %129 = vector.broadcast %cst_50 : f32 to vector<16x1xf32>
      %130 = arith.addf %129, %128 : vector<16x1xf32>
      %131 = arith.divf %129, %130 : vector<16x1xf32>
      %132 = vector.broadcast %131 : vector<16x1xf32> to vector<16x128xf32>
      %133 = arith.mulf %132, %74 : vector<16x128xf32>
      %cst_51 = arith.constant 1.000000e+00 : f32
      %134 = vector.broadcast %cst_51 : f32 to vector<16x1xf32>
      %135 = arith.subf %134, %131 : vector<16x1xf32>
      %136 = vector.broadcast %135 : vector<16x1xf32> to vector<16x128xf32>
      %137 = arith.mulf %136, %119 : vector<16x128xf32>
      %138 = arith.addf %133, %137 : vector<16x128xf32>
      %139 = arith.index_cast %arg11 : i32 to index
      %c0_52 = arith.constant 0 : index
      %c0_53 = arith.constant 0 : index
      %140 = vector.load %arg5[%139, %c0_52, %c0_53] : memref<4x32x128xf32, #tpu.memory_space<vmem>>, vector<1x32x128xf32>
      %141 = vector.shape_cast %140 : vector<1x32x128xf32> to vector<32x128xf32>
      %cst_54 = arith.constant dense<0.000000e+00> : vector<16x32xf32>
      %142 = tpu.matmul %138, %141, %cst_54 {dimension_numbers = #tpu.dot_dimension_numbers<[1], [1], [0], [0], [0, 0, 1, 0], [], []>} : vector<16x128xf32>, vector<32x128xf32>, vector<16x32xf32> -> vector<16x32xf32>
      %143 = vector.broadcast %77 : vector<1x32xf32> to vector<16x32xf32>
      %144 = arith.addf %142, %143 : vector<16x32xf32>
      %cst_55 = arith.constant 0.000000e+00 : f32
      %145 = vector.broadcast %cst_55 : f32 to vector<16x32xf32>
      %146 = arith.maximumf %144, %145 : vector<16x32xf32>
      %cst_56 = arith.constant dense<0.000000e+00> : vector<32xf32>
      %147 = vector.multi_reduction <add>, %146, %cst_56 [0] : vector<16x32xf32> to vector<32xf32>
      %148 = vector.shape_cast %147 : vector<32xf32> to vector<1x32xf32>
      %cst_57 = arith.constant 1.600000e+01 : f32
      %149 = vector.broadcast %cst_57 : f32 to vector<1x32xf32>
      %150 = arith.divf %148, %149 : vector<1x32xf32>
      %151 = vector.broadcast %150 : vector<1x32xf32> to vector<16x32xf32>
      %152 = arith.subf %146, %151 : vector<16x32xf32>
      %153 = arith.mulf %152, %152 : vector<16x32xf32>
      %cst_58 = arith.constant dense<0.000000e+00> : vector<32xf32>
      %154 = vector.multi_reduction <add>, %153, %cst_58 [0] : vector<16x32xf32> to vector<32xf32>
      %155 = vector.shape_cast %154 : vector<32xf32> to vector<1x32xf32>
      %cst_59 = arith.constant 1.600000e+01 : f32
      %156 = vector.broadcast %cst_59 : f32 to vector<1x32xf32>
      %157 = arith.divf %155, %156 : vector<1x32xf32>
      %158 = vector.broadcast %150 : vector<1x32xf32> to vector<16x32xf32>
      %159 = arith.subf %146, %158 : vector<16x32xf32>
      %cst_60 = arith.constant 9.99999974E-6 : f32
      %160 = vector.broadcast %cst_60 : f32 to vector<1x32xf32>
      %161 = arith.addf %157, %160 : vector<1x32xf32>
      %162 = math.rsqrt %161 : vector<1x32xf32>
      %163 = vector.broadcast %162 : vector<1x32xf32> to vector<16x32xf32>
      %164 = arith.mulf %159, %163 : vector<16x32xf32>
      %165 = vector.broadcast %78 : vector<1x32xf32> to vector<16x32xf32>
      %166 = arith.mulf %164, %165 : vector<16x32xf32>
      %167 = vector.broadcast %79 : vector<1x32xf32> to vector<16x32xf32>
      %168 = arith.addf %166, %167 : vector<16x32xf32>
      scf.yield %168 : vector<16x32xf32>
    }
    %c4_i32_10 = arith.constant 4 : i32
    %cst_11 = arith.constant 0.000000e+00 : f32
    %16 = vector.broadcast %cst_11 : f32 to vector<16x96xf32>
    %17 = tpu.concatenate %15, %16 in 1 : vector<16x32xf32>, vector<16x96xf32> -> vector<16x128xf32>
    %c0_12 = arith.constant 0 : index
    %c0_13 = arith.constant 0 : index
    %c0_14 = arith.constant 0 : index
    %18 = vector.load %arg10[%c0_12, %c0_13, %c0_14] : memref<1x16x128xf32, #tpu.memory_space<vmem>>, vector<1x16x128xf32>
    %19 = vector.shape_cast %18 : vector<1x16x128xf32> to vector<16x128xf32>
    %20 = vector.shape_cast %17 : vector<16x128xf32> to vector<1x16x128xf32>
    tpu.vector_store %arg10[%c0_12, %c0_13, %c0_14], %20 {strides = array<i32>} : memref<1x16x128xf32, #tpu.memory_space<vmem>>, vector<1x16x128xf32>,
    %c0_15 = arith.constant 0 : index
    %c0_16 = arith.constant 0 : index
    %21 = vector.load %arg8[%c0_15, %c0_16] : memref<4x128xf32, #tpu.memory_space<vmem>>, vector<4x128xf32>
    %c0_17 = arith.constant 0 : index
    %c0_18 = arith.constant 0 : index
    %c0_19 = arith.constant 0 : index
    %22 = vector.load %arg7[%c0_17, %c0_18, %c0_19] : memref<4x128x128xf32, #tpu.memory_space<vmem>>, vector<1x32x128xf32>
    %23 = vector.shape_cast %22 : vector<1x32x128xf32> to vector<32x128xf32>
    %cst_20 = arith.constant dense<0.000000e+00> : vector<16x128xf32>
    %24 = tpu.matmul %15, %23, %cst_20 {dimension_numbers = #tpu.dot_dimension_numbers<[1], [0], [0], [1], [0, 0, 1, 1], [], []>} : vector<16x32xf32>, vector<32x128xf32>, vector<16x128xf32> -> vector<16x128xf32>
    %25 = vector.extract_strided_slice %21 {offsets = [0, 0], sizes = [1, 128], strides = [1, 1]} : vector<4x128xf32> to vector<1x128xf32>
    %26 = vector.broadcast %25 : vector<1x128xf32> to vector<16x128xf32>
    %27 = arith.addf %24, %26 : vector<16x128xf32>
    %cst_21 = arith.constant 0.000000e+00 : f32
    %28 = vector.broadcast %cst_21 : f32 to vector<16x128xf32>
    %29 = arith.maximumf %27, %28 : vector<16x128xf32>
    %c1 = arith.constant 1 : index
    %c0_22 = arith.constant 0 : index
    %c0_23 = arith.constant 0 : index
    %30 = vector.load %arg7[%c1, %c0_22, %c0_23] : memref<4x128x128xf32, #tpu.memory_space<vmem>>, vector<1x128x128xf32>
    %31 = vector.shape_cast %30 : vector<1x128x128xf32> to vector<128x128xf32>
    %cst_24 = arith.constant dense<0.000000e+00> : vector<16x128xf32>
    %32 = tpu.matmul %29, %31, %cst_24 {dimension_numbers = #tpu.dot_dimension_numbers<[1], [0], [0], [1], [0, 0, 1, 1], [], []>} : vector<16x128xf32>, vector<128x128xf32>, vector<16x128xf32> -> vector<16x128xf32>
    %33 = vector.extract_strided_slice %21 {offsets = [1, 0], sizes = [1, 128], strides = [1, 1]} : vector<4x128xf32> to vector<1x128xf32>
    %34 = vector.broadcast %33 : vector<1x128xf32> to vector<16x128xf32>
    %35 = arith.addf %32, %34 : vector<16x128xf32>
    %cst_25 = arith.constant 0.000000e+00 : f32
    %36 = vector.broadcast %cst_25 : f32 to vector<16x128xf32>
    %37 = arith.maximumf %35, %36 : vector<16x128xf32>
    %c2 = arith.constant 2 : index
    %c0_26 = arith.constant 0 : index
    %c0_27 = arith.constant 0 : index
    %38 = vector.load %arg7[%c2, %c0_26, %c0_27] : memref<4x128x128xf32, #tpu.memory_space<vmem>>, vector<1x128x128xf32>
    %39 = vector.shape_cast %38 : vector<1x128x128xf32> to vector<128x128xf32>
    %cst_28 = arith.constant dense<0.000000e+00> : vector<16x128xf32>
    %40 = tpu.matmul %37, %39, %cst_28 {dimension_numbers = #tpu.dot_dimension_numbers<[1], [0], [0], [1], [0, 0, 1, 1], [], []>} : vector<16x128xf32>, vector<128x128xf32>, vector<16x128xf32> -> vector<16x128xf32>
    %41 = vector.extract_strided_slice %21 {offsets = [2, 0], sizes = [1, 128], strides = [1, 1]} : vector<4x128xf32> to vector<1x128xf32>
    %42 = vector.broadcast %41 : vector<1x128xf32> to vector<16x128xf32>
    %43 = arith.addf %40, %42 : vector<16x128xf32>
    %cst_29 = arith.constant 0.000000e+00 : f32
    %44 = vector.broadcast %cst_29 : f32 to vector<16x128xf32>
    %45 = arith.maximumf %43, %44 : vector<16x128xf32>
    %c3 = arith.constant 3 : index
    %c0_30 = arith.constant 0 : index
    %c0_31 = arith.constant 0 : index
    %46 = vector.load %arg7[%c3, %c0_30, %c0_31] : memref<4x128x128xf32, #tpu.memory_space<vmem>>, vector<1x128x128xf32>
    %47 = vector.shape_cast %46 : vector<1x128x128xf32> to vector<128x128xf32>
    %cst_32 = arith.constant dense<0.000000e+00> : vector<16x128xf32>
    %48 = tpu.matmul %45, %47, %cst_32 {dimension_numbers = #tpu.dot_dimension_numbers<[1], [0], [0], [1], [0, 0, 1, 1], [], []>} : vector<16x128xf32>, vector<128x128xf32>, vector<16x128xf32> -> vector<16x128xf32>
    %49 = vector.extract_strided_slice %21 {offsets = [3, 0], sizes = [1, 128], strides = [1, 1]} : vector<4x128xf32> to vector<1x128xf32>
    %50 = vector.broadcast %49 : vector<1x128xf32> to vector<16x128xf32>
    %51 = arith.addf %48, %50 : vector<16x128xf32>
    %c0_33 = arith.constant 0 : index
    %c0_34 = arith.constant 0 : index
    %c0_35 = arith.constant 0 : index
    %52 = vector.load %arg9[%c0_33, %c0_34, %c0_35] : memref<1x16x128xf32, #tpu.memory_space<vmem>>, vector<1x16x128xf32>
    %53 = vector.shape_cast %52 : vector<1x16x128xf32> to vector<16x128xf32>
    %54 = vector.shape_cast %51 : vector<16x128xf32> to vector<1x16x128xf32>
    tpu.vector_store %arg9[%c0_33, %c0_34, %c0_35], %54 {strides = array<i32>} : memref<1x16x128xf32, #tpu.memory_space<vmem>>, vector<1x16x128xf32>,
    return
  }
  func.func @transform_0(%arg0: i32) -> (i32, i32, i32) {
    %c0_i32 = arith.constant 0 : i32
    %c0_i32_0 = arith.constant 0 : i32
    %c0_i32_1 = arith.constant 0 : i32
    return %arg0, %c0_i32, %c0_i32_0 : i32, i32, i32
  }
  func.func @transform_1(%arg0: i32) -> (i32, i32, i32) {
    %c0_i32 = arith.constant 0 : i32
    %c0_i32_0 = arith.constant 0 : i32
    %c0_i32_1 = arith.constant 0 : i32
    return %arg0, %c0_i32, %c0_i32_0 : i32, i32, i32
  }
  func.func @transform_2(%arg0: i32) -> (i32, i32, i32) {
    %c0_i32 = arith.constant 0 : i32
    %c0_i32_0 = arith.constant 0 : i32
    %c0_i32_1 = arith.constant 0 : i32
    return %arg0, %c0_i32, %c0_i32_0 : i32, i32, i32
  }
  func.func @transform_3(%arg0: i32) -> (i32, i32, i32) {
    %c0_i32 = arith.constant 0 : i32
    %c0_i32_0 = arith.constant 0 : i32
    %c0_i32_1 = arith.constant 0 : i32
    %c0_i32_2 = arith.constant 0 : i32
    return %c0_i32, %c0_i32_0, %c0_i32_1 : i32, i32, i32
  }
  func.func @transform_4(%arg0: i32) -> (i32, i32, i32) {
    %c0_i32 = arith.constant 0 : i32
    %c0_i32_0 = arith.constant 0 : i32
    %c0_i32_1 = arith.constant 0 : i32
    %c0_i32_2 = arith.constant 0 : i32
    return %c0_i32, %c0_i32_0, %c0_i32_1 : i32, i32, i32
  }
  func.func @transform_5(%arg0: i32) -> (i32, i32, i32) {
    %c0_i32 = arith.constant 0 : i32
    %c0_i32_0 = arith.constant 0 : i32
    %c0_i32_1 = arith.constant 0 : i32
    %c0_i32_2 = arith.constant 0 : i32
    return %c0_i32, %c0_i32_0, %c0_i32_1 : i32, i32, i32
  }
  func.func @transform_6(%arg0: i32) -> (i32, i32, i32) {
    %c0_i32 = arith.constant 0 : i32
    %c0_i32_0 = arith.constant 0 : i32
    %c0_i32_1 = arith.constant 0 : i32
    %c0_i32_2 = arith.constant 0 : i32
    return %c0_i32, %c0_i32_0, %c0_i32_1 : i32, i32, i32
  }
  func.func @transform_7(%arg0: i32) -> (i32, i32) {
    %c0_i32 = arith.constant 0 : i32
    %c0_i32_0 = arith.constant 0 : i32
    %c0_i32_1 = arith.constant 0 : i32
    return %c0_i32, %c0_i32_0 : i32, i32
  }
  func.func @transform_8(%arg0: i32) -> (i32, i32, i32) {
    %c0_i32 = arith.constant 0 : i32
    %c0_i32_0 = arith.constant 0 : i32
    %c0_i32_1 = arith.constant 0 : i32
    return %arg0, %c0_i32, %c0_i32_0 : i32, i32, i32
  }
  func.func @transform_9(%arg0: i32) -> (i32, i32, i32) {
    %c0_i32 = arith.constant 0 : i32
    %c0_i32_0 = arith.constant 0 : i32
    %c0_i32_1 = arith.constant 0 : i32
    return %arg0, %c0_i32, %c0_i32_0 : i32, i32, i32
  }
}

</mosaic_0001>

<bundles_post_ra>
// kernel: qnetwork_forward.1
= control target key start
LH: loop header
LB: loop body
LE: loop exit
PB: predicated region body
PF: predicated region fallthrough
CT: control target
= control target key end

     0   :  { %15 = vsyncpa [#allocation3], 0  ;;  %s3133_s0 = inlined_call_operand.vmem [shape: f32[1,16,32], index: 0, kind: input, shape index: {}]   ;;  %s3134_s1 = inlined_call_operand.vmem [shape: f32[1,16,16], index: 1, kind: input, shape index: {}]   ;;  %s3135_s2 = inlined_call_operand.vmem [shape: f32[1,16,16], index: 2, kind: input, shape index: {}]   ;;  %s3136_s3 = inlined_call_operand.hbm [shape: f32[4,32,512], index: 3, kind: input, shape index: {}]   ;;  %s3137_s4 = inlined_call_operand.hbm [shape: f32[4,32,128], index: 4, kind: input, shape index: {}]   ;;  %s3138_s5 = inlined_call_operand.hbm [shape: f32[4,8,512], index: 5, kind: input, shape index: {}]   ;;  %s3139_s6 = inlined_call_operand.hbm [shape: f32[4,128,128], index: 6, kind: input, shape index: {}]   ;;  %s3140_s7 = inlined_call_operand.vmem [shape: f32[4,128], index: 7, kind: input, shape index: {}]   ;;  %s3141_s8 = inlined_call_operand.vmem [shape: f32[1,16,128], index: 8, kind: output, shape index: {0}]   ;;  %s3142_s9 = inlined_call_operand.vmem [shape: f32[1,16,128], index: 9, kind: output, shape index: {1}]  }
   0x1   :  { %16 = vsyncpa [#allocation5], 0  ;;  %s41_s11 = sshll.u32 %s3137_s4, 4  ;;  %s42_s11 = int_to_ptr.hbm [resolvable:$true] %s41_s11 }
   0x2   :  { %17 = vsyncpa [#allocation8], 0  ;;  %s2306_s12 = smov [#allocation4]   ;;  %s28_s16 = sshll.u32 %s3136_s3, 4  ;;  %s29_s16 = int_to_ptr.hbm [resolvable:$true] %s28_s16 }
   0x3   :  { %s43_s13 = sshll.u32 %s2306_s12, 4  ;;  %s2307_s17 = smov 128   ;;  %s44_s13 = int_to_ptr.vmem [resolvable:$true] %s43_s13 }
   0x4   :  { %s2308_s18 = smov 8   ;;  %s2309_s19 = smov [#allocation2]  }
   0x5   :  { %49 = dma.hbm_to_vmem [thread:$0]  %s42_s11, 2048, %s44_s13, [#allocation5], %s2307_s17, %s2307_s17, %s2308_s18  }
   0x6   :  { %s30_s20 = sshll.u32 %s2309_s19, 4  ;;  %s2310_s21 = smov 512   ;;  %s31_s20 = int_to_ptr.vmem [resolvable:$true] %s30_s20 }
   0x7   :  { %s2311_s22 = smov 32   ;;  %s54_s24 = sshll.u32 %s3138_s5, 4  ;;  %s55_s24 = int_to_ptr.hbm [resolvable:$true] %s54_s24 }
   0x8   :  { %36 = dma.hbm_to_vmem [thread:$0]  %s29_s16, 8192, %s31_s20, [#allocation3], %s2310_s21, %s2310_s21, %s2311_s22  }
   0x9   :  { %s2312_s25 = smov [#allocation6]   ;;  %s67_s28 = sshll.u32 %s3139_s6, 4  ;;  %s68_s28 = int_to_ptr.hbm [resolvable:$true] %s67_s28 }
   0xa   :  { %s56_s26 = sshll.u32 %s2312_s25, 4  ;;  %s2313_s29 = smov [#allocation7]   ;;  %s57_s26 = int_to_ptr.vmem [resolvable:$true] %s56_s26 }
   0xb   :  { %62 = dma.hbm_to_vmem [thread:$0]  %s55_s24, 2048, %s57_s26, [#allocation5], %s2310_s21, %s2310_s21, %s2311_s22  }
   0xc   :  { %s69_s30 = sshll.u32 %s2313_s29, 4  ;;  %s70_s30 = int_to_ptr.vmem [resolvable:$true] %s69_s30 }
   0xd   :  { %75 = dma.hbm_to_vmem [thread:$0]  %s68_s28, 8192, %s70_s30, [#allocation8], %s2307_s17, %s2307_s17, %s2308_s18  }
   0xe   :  { %2288 = dma.done.wait [#allocation3], 8192  }
   0xf   :  { %2289 = vsyncadd [#allocation3], 4294959104 }
  0x10   :  { %2290 = dma.done.wait [#allocation5], 4096  }
  0x11   :  { %2291 = vsyncadd [#allocation5], 4294963200 }
  0x12   :  { %2292 = dma.done.wait [#allocation8], 8192  }
  0x13   :  { %2293 = vsyncadd [#allocation8], 4294959104  ;;  %v2386_v0 = vld [vmem:[%s3134_s1] sm:$0xff]  ;;  %v2391_v1 = vld [vmem:[%s3134_s1 + $0x8] sm:$0xff]  ;;  %v2314_v6 = vmov -1e+30  }
  0x14   :  { %v2396_v2 = vld [vmem:[%s3135_s2] sm:$0xff]  ;;  %v2401_v3 = vld [vmem:[%s3135_s2 + $0x8] sm:$0xff]  ;;  %vm98_vm0 = vcmp.gt.f32.partialorder %v2386_v0, 0.0  ;;  %vm99_vm1 = vcmp.gt.f32.partialorder %v2391_v1, 0.0  ;;  %s2419_s2 = smov 0  }
  0x15   :  { %v102_v4 = vld [vmem:[%s3133_s0] sm:$0xff]   ;;  %v103_v5 = vld [vmem:[%s3133_s0 + $0x8] sm:$0xff]   ;;  %v2411_v7 = vsel %vm98_vm0, 0.0, %v2314_v6  ;;  %v2413_v8 = vsel %vm99_vm1, 0.0, %v2314_v6 }
  0x16 LB: > { %s2075_s0 = sshll.u32 %s2304_s2, 7  ;;  %s2074_s19 = sshll.u32 %s2304_s2, 5  ;;  %vm142_vm2 = vcmask 261120   ;;  %v2318_v32 = vmov 1983009808   ;;  %vm262_vm3 = vcmask 1047556   ;;  %s2304_s2 = sphi %s2419_s2, %s109_s2   ;;  %v2300_v4 = vphi %v102_v4, %v3144_v4   ;;  %v2296_v5 = vphi %v103_v5, %v3143_v5  }
  0x17   : > { %s2432_s20 = scalar_lea.vmem [#allocation2], %s2075_s0  ;;  %s2439_s21 = scalar_lea.vmem [#allocation6], %s2074_s19  ;;  %v267_v33 = vunpack.c.l.s4 %v2318_v32  ;;  %v2319_v40 = vmov 1934713408   ;;  %vm1176_vm4 = vcmask 130048   ;;  %vm1683_vm5 = vcmask 523264  }
  0x18   : > { %v134_v9 = vld [vmem:[%s2432_s20 + $0x60] sm:$0xff]  ;;  %v135_v14 = vld [vmem:[%s2432_s20 + $0x68] sm:$0xff]  ;;  %s2315_s22 = smov 64   ;;  %s2316_s4 = smov 96   ;;  %v136_v30 = vld [vmem:[%s2432_s20 + $0x70] sm:$0xff]  ;;  %v291_v41 = vunpack.c.l.s4 %v2319_v40  ;;  %vm1686_vm6 = vcmask 785408  }
  0x19   : > { %v130_v10 = vld [vmem:[%s2432_s20 + $0x40] sm:$0xff]  ;;  %2076 = vmatpush.msra.mxu1 %v134_v9  ;;  %161 = vmatpush.msra.mxu0 %v134_v9  ;;  %v131_v15 = vld [vmem:[%s2432_s20 + $0x48] sm:$0xff]  ;;  %s2317_s23 = smov 32   ;;  %v132_v37 = vld [vmem:[%s2432_s20 + $0x50] sm:$0xff]  ;;  %v2486_v38 = vunpack.c.0.s8 %v267_v33  ;;  %s1748_s24 = scalar_lea.vmem [#allocation4], %s2074_s19 }
  0x1a   : > { %v126_v11 = vld [vmem:[%s2432_s20 + $0x20] sm:$0xff]  ;;  %v127_v16 = vld [vmem:[%s2432_s20 + $0x28] sm:$0xff]  ;;  %207 = vmatpush.msra.mxu2 %v136_v30  ;;  %v137_v42 = vld [vmem:[%s2432_s20 + $0x78] sm:$0xff]  ;;  %v2495_v50 = vunpack.c.0.s8 %v291_v41  ;;  %s109_s2 = sadd.s32 1, %s2304_s2  }
  0x1b   : > { %v115_v12 = vld [vmem:[%s2439_s21] sm:$0xff]  ;;  %2077 = vmatpush.msra.mxu1 %v130_v10  ;;  %162 = vmatpush.msra.mxu0 %v130_v10  ;;  %v123_v17 = vld [vmem:[%s2432_s20 + $0x8] sm:$0xff]  ;;  %v128_v43 = vld [vmem:[%s2432_s20 + $0x30] sm:$0xff]  ;;  %p106_p0 = scmp.ge.s32.totalorder %s109_s2, 4  }
  0x1c   : > { %963 = vst [vmem:[#allocation1] sm:$0xff] %v115_v12  ;;  %v122_v13 = vld [vmem:[%s2432_s20] sm:$0xff]  ;;  %v116_v19 = vld [vmem:[%s2439_s21 + $0x8] sm:$0xff]  ;;  %v138_v26 = vperm.slane %v115_v12, 0  ;;  %208 = vmatpush.msra.mxu2 %v132_v37  ;;  %230 = vmatpush.msra.mxu3 %v137_v42  ;;  %v133_v46 = vld [vmem:[%s2432_s20 + $0x58] sm:$0xff] }
  0x1d   : > { %2078 = vmatpush.msra.mxu1 %v126_v11  ;;  %163 = vmatpush.msra.mxu0 %v126_v11  ;;  %v139_v20 = vperm.slane %v116_v19, 0  ;;  %v124_v47 = vld [vmem:[%s2432_s20 + $0x10] sm:$0xff]  ;;  %v129_v53 = vld [vmem:[%s2432_s20 + $0x38] sm:$0xff] }
  0x1e   : > { %209 = vmatpush.msra.mxu2 %v128_v43  ;;  %231 = vmatpush.msra.mxu3 %v133_v46  ;;  %v125_v58 = vld [vmem:[%s2432_s20 + $0x18] sm:$0xff] }
  0x1f   : > { %2079 = vmatpush.msra.mxu1 %v122_v13  ;;  %164 = vmatpush.msra.mxu0 %v122_v13 }
  0x20   : > { %2038 = vmatmul.msk.f32.vlgmr.msra.gmra.mxu1 %vm142_vm2, %v2296_v5  ;;  %2037 = vmatmul.msk.f32.vlgmr.msra.gmra.mxu0 %vm142_vm2, %v2300_v4 }
  0x21   : > { %184 = vmatpush.msrb.mxu1 %v135_v14  ;;  %210 = vmatpush.msra.mxu2 %v124_v47 }
  0x22   : > { %2041 = vmatmul.msk.f32.vlgmr.msra.gmra.mxu2 %vm142_vm2, %v2300_v4  ;;  %232 = vmatpush.msra.mxu3 %v129_v53 }
  0x23   : > { %185 = vmatpush.msrb.mxu1 %v131_v15 }
  0x24   : > { %233 = vmatpush.msra.mxu3 %v125_v58 }
  0x25   : > { %186 = vmatpush.msrb.mxu1 %v127_v16  ;;  %2043 = vmatmul.msk.f32.vlgmr.msra.gmra.mxu3 %vm142_vm2, %v2300_v4 }
  0x27   : > { %187 = vmatpush.msrb.mxu1 %v123_v17 }
  0x28   : > { %2039 = vmatmul.msk.f32.vlgmr.msrb.gmra.mxu1 %vm142_vm2, %v2300_v4 }
  0x2a   : > { %2042 = vmatmul.msk.f32.gmra.mxu2 %vm142_vm2, %v2296_v5 }
  0x2d   : > { %2044 = vmatmul.msk.f32.gmra.mxu3 %vm142_vm2, %v2296_v5 }
  0x30   : > { %2040 = vmatmul.msk.f32.gmra.mxu1 %vm142_vm2, %v2296_v5 }
  0x9d   : > { %v169_v18 = vpop.f32.mrf.mxu1  ;;  %v166_v25 = vpop.f32.mrf.mxu0 }
  0x9e   : > { %v2465_v27 = vadd.f32 %v166_v25, %v138_v26  ;;  %v2473_v28 = vadd.f32 %v169_v18, %v138_v26 }
  0xa0   : > { %v264_v16 = vrot.slane %v2465_v27, 4  ;;  %v320_v17 = vrot.slane %v2473_v28, 4 }
  0xa5   : > { %v189_v21 = vpop.f32.mrf.mxu1 }
  0xa6   : > { %v190_v22 = vadd.f32 %v189_v21, %v139_v20 }
  0xa8   : > { %490 = vrot.lane.b32.xlu2 %v190_v22, %s2315_s22  ;;  %484 = vrot.lane.b32.xlu1 %v190_v22, %s2316_s4  ;;  %v504_v36 = vrot.slane %v190_v22, 4 }
  0xad   : > { %v192_v23 = vpop.f32.mrf.mxu1 }
  0xae   : > { %v2458_v24 = vadd.f32 %v192_v23, %v139_v20 }
  0xb0   : > { %486 = vrot.lane.b32.xlu0 %v2458_v24, %s2316_s4  ;;  %496 = vrot.lane.b32.xlu2 %v190_v22, %s2317_s23  ;;  %v560_v43 = vrot.slane %v2458_v24, 4 }
  0xb1   : > { %498 = vrot.lane.b32.xlu1 %v2458_v24, %s2317_s23 }
  0xb8   : > { %492 = vrot.lane.b32.xlu0 %v2458_v24, %s2315_s22  ;;  %255 = vrot.lane.b32.xlu2 %v2465_v27, %s2317_s23 }
  0xb9   : > { %249 = vrot.lane.b32.xlu1 %v2465_v27, %s2315_s22 }
  0xc0   : > { %243 = vrot.lane.b32.xlu0 %v2465_v27, %s2316_s4  ;;  %257 = vrot.lane.b32.xlu2 %v2473_v28, %s2317_s23 }
  0xc1   : > { %251 = vrot.lane.b32.xlu1 %v2473_v28, %s2315_s22 }
  0xc8   : > { %245 = vrot.lane.b32.xlu0 %v2473_v28, %s2316_s4 }
 0x102   : > { %v491_v29 = vpop.permute.xlu2 %490 }
 0x103   : > { %v502_v31 = vrot.slane %v491_v29, 4  ;;  %v505_v39 = vsel %vm262_vm3, %v491_v29, %v504_v36 }
 0x104   : > { %v513_v48 = vperm.slane %v505_v39, %v2486_v38 }
 0x105   : > { %v503_v35 = vsel %vm262_vm3, %v502_v31, %v190_v22 }
 0x106   : > { %v509_v44 = vperm.slane %v503_v35, %v2486_v38  ;;  %v540_v59 = vrot.slane %v513_v48, 4 }
 0x108   : > { %v528_v54 = vrot.slane %v509_v44, 4 }
 0x10a   : > { %v497_v34 = vpop.permute.xlu2 %496 }
 0x10b   : > { %v514_v45 = vrot.slane %v497_v34, 4 }
 0x112   : > { %v2501_v55 = vpop.permute.xlu2 %255 }
 0x113   : > { %v274_v47 = vrot.slane %v2501_v55, 4 }
 0x11a   : > { %v485_v49 = vpop.permute.xlu1 %484 }
 0x11b   : > { %v515_v51 = vsel %vm262_vm3, %v514_v45, %v485_v49  ;;  %v516_v52 = vrot.slane %v485_v49, 4 }
 0x11c   : > { %v521_v56 = vperm.slane %v515_v51, %v2486_v38 }
 0x11d   : > { %v517_v57 = vsel %vm262_vm3, %v497_v34, %v516_v52  ;;  %v2526_v34 = vpop.permute.xlu2 %257 }
 0x11e   : > { %v525_v60 = vperm.slane %v517_v57, %v2486_v38  ;;  %v526_v61 = vrot.slane %v521_v56, 4  ;;  %v529_v62 = vsel %vm262_vm3, %v521_v56, %v528_v54 }
 0x11f   : > { %v537_v63 = vperm.slane %v529_v62, %v2495_v50 }
 0x120   : > { %v527_v6 = vsel %vm262_vm3, %v526_v61, %v509_v44  ;;  %v538_v9 = vrot.slane %v525_v60, 4  ;;  %v541_v10 = vsel %vm262_vm3, %v525_v60, %v540_v59 }
 0x121   : > { %v533_v11 = vperm.slane %v527_v6, %v2495_v50  ;;  %v549_v12 = vperm.slane %v541_v10, %v2495_v50  ;;  %v552_v13 = vrot.slane %v537_v63, 4 }
 0x122   : > { %v539_v14 = vsel %vm262_vm3, %v538_v9, %v513_v48  ;;  %v487_v15 = vpop.permute.xlu0 %486  ;;  %v330_v48 = vrot.slane %v2526_v34, 4 }
 0x123   : > { %v545_v18 = vperm.slane %v539_v14, %v2495_v50  ;;  %v550_v4 = vrot.slane %v533_v11, 4  ;;  %v553_v19 = vsel %vm262_vm3, 0.0, %v552_v13  ;;  %v556_v20 = vrot.slane %v549_v12, 4  ;;  %v499_v21 = vpop.permute.xlu1 %498 }
 0x124   : > { %v614_v22 = vsel %vm262_vm3, %v552_v13, %v533_v11  ;;  %v619_v23 = vrot.slane %v553_v19, 4  ;;  %v572_v25 = vrot.slane %v487_v15, 4  ;;  %v570_v26 = vrot.slane %v499_v21, 4 }
 0x125   : > { %v551_v29 = vsel %vm262_vm3, 0.0, %v550_v4  ;;  %v554_v30 = vrot.slane %v545_v18, 4  ;;  %v557_v31 = vsel %vm262_vm3, 0.0, %v556_v20  ;;  %v618_v32 = vperm.slane %v614_v22, %v2486_v38 }
 0x126   : > { %v630_v33 = vrot.slane %v557_v31, 4  ;;  %v571_v35 = vsel %vm262_vm3, %v570_v26, %v487_v15  ;;  %v573_v36 = vsel %vm262_vm3, %v499_v21, %v572_v25  ;;  %v620_v37 = vsel %vm262_vm3, %v619_v23, %v551_v29 }
 0x127   : > { %v577_v39 = vperm.slane %v571_v35, %v2486_v38  ;;  %v581_v40 = vperm.slane %v573_v36, %v2486_v38  ;;  %v555_v41 = vsel %vm262_vm3, 0.0, %v554_v30  ;;  %v624_v42 = vperm.slane %v620_v37, %v2486_v38 }
 0x128   : > { %v625_v44 = vsel %vm262_vm3, %v556_v20, %v545_v18  ;;  %v631_v45 = vsel %vm262_vm3, %v630_v33, %v555_v41  ;;  %v638_v46 = vrot.slane %v618_v32, 4 }
 0x129   : > { %v629_v49 = vperm.slane %v625_v44, %v2486_v38  ;;  %v635_v51 = vperm.slane %v631_v45, %v2486_v38  ;;  %v582_v5 = vrot.slane %v577_v39, 4  ;;  %v594_v52 = vrot.slane %v581_v40, 4 }
 0x12a   : > { %v493_v53 = vpop.permute.xlu0 %492  ;;  %v639_v54 = vsel %vm262_vm3, %v624_v42, %v638_v46  ;;  %v636_v56 = vrot.slane %v624_v42, 4 }
 0x12b   : > { %v558_v57 = vrot.slane %v493_v53, 4  ;;  %v561_v58 = vsel %vm262_vm3, %v493_v53, %v560_v43  ;;  %v250_v59 = vpop.permute.xlu1 %249  ;;  %v2547_v60 = vperm.slane %v639_v54, %v2495_v50  ;;  %v650_v61 = vrot.slane %v629_v49, 4 }
 0x12c   : > { %v569_v62 = vperm.slane %v561_v58, %v2486_v38  ;;  %v261_v63 = vrot.slane %v250_v59, 4  ;;  %v265_v6 = vsel %vm262_vm3, %v250_v59, %v264_v16  ;;  %v637_v9 = vsel %vm262_vm3, %v636_v56, %v618_v32 }
 0x12d   : > { %v559_v10 = vsel %vm262_vm3, %v558_v57, %v2458_v24  ;;  %v273_v11 = vperm.slane %v265_v6, %v2486_v38  ;;  %v651_v12 = vsel %vm262_vm3, %v635_v51, %v650_v61  ;;  %v2557_v13 = vperm.slane %v637_v9, %v2495_v50 }
 0x12e   : > { %v565_v14 = vperm.slane %v559_v10, %v2486_v38  ;;  %v595_v15 = vsel %vm262_vm3, %v594_v52, %v569_v62  ;;  %v596_v18 = vrot.slane %v569_v62, 4  ;;  %v263_v16 = vsel %vm262_vm3, %v261_v63, %v2465_v27 }
 0x12f   : > { %v601_v4 = vperm.slane %v595_v15, %v2495_v50  ;;  %v269_v19 = vperm.slane %v263_v16, %v2486_v38  ;;  %v300_v24 = vrot.slane %v273_v11, 4  ;;  %v2566_v20 = vperm.slane %v651_v12, %v2495_v50 }
 0x130   : > { %v583_v21 = vsel %vm262_vm3, %v582_v5, %v565_v14  ;;  %v584_v22 = vrot.slane %v565_v14, 4  ;;  %v597_v23 = vsel %vm262_vm3, %v581_v40, %v596_v18  ;;  %v648_v25 = vrot.slane %v635_v51, 4 }
 0x131   : > { %v2571_v26 = vperm.slane %v583_v21, %v2495_v50  ;;  %v605_v29 = vperm.slane %v597_v23, %v2495_v50  ;;  %v610_v27 = vrot.slane %v601_v4, 4  ;;  %v288_v30 = vrot.slane %v269_v19, 4 }
 0x132   : > { %v585_v31 = vsel %vm262_vm3, %v577_v39, %v584_v22  ;;  %v244_v32 = vpop.permute.xlu0 %243  ;;  %v664_v33 = vrot.slane %v2566_v20, 4  ;;  %v2577_v35 = vsel %vm262_vm3, %v648_v25, %v629_v49  ;;  %v666_v36 = vrot.slane %v2547_v60, 4 }
 0x133   : > { %v593_v37 = vperm.slane %v585_v31, %v2495_v50  ;;  %v606_v40 = vrot.slane %v2571_v26, 4  ;;  %v611_v41 = vsel %vm262_vm3, 0.0, %v610_v27  ;;  %v612_v42 = vrot.slane %v605_v29, 4  ;;  %v252_v43 = vpop.permute.xlu1 %251 }
 0x134   : > { %v275_v44 = vsel %vm262_vm3, %v274_v47, %v244_v32  ;;  %v276_v45 = vrot.slane %v244_v32, 4  ;;  %v318_v39 = vrot.slane %v252_v43, 4  ;;  %v321_v46 = vsel %vm262_vm3, %v252_v43, %v320_v17 }
 0x135   : > { %v608_v49 = vrot.slane %v593_v37, 4  ;;  %v613_v51 = vsel %vm262_vm3, 0.0, %v612_v42  ;;  %v679_v5 = vsel %vm262_vm3, %v612_v42, %v601_v4  ;;  %v281_v52 = vperm.slane %v275_v44, %v2486_v38 }
 0x136   : > { %v2591_v53 = vperm.slane %v679_v5, %v2486_v38  ;;  %v684_v54 = vrot.slane %v613_v51, 4  ;;  %v277_v47 = vsel %vm262_vm3, %v2501_v55, %v276_v45  ;;  %v319_v56 = vsel %vm262_vm3, %v318_v39, %v2473_v28 }
 0x137   : > { %v609_v57 = vsel %vm262_vm3, 0.0, %v608_v49  ;;  %v285_v17 = vperm.slane %v277_v47, %v2486_v38  ;;  %v286_v58 = vrot.slane %v281_v52, 4  ;;  %v289_v59 = vsel %vm262_vm3, %v281_v52, %v288_v30 }
 0x138   : > { %v685_v61 = vsel %vm262_vm3, %v684_v54, %v611_v41  ;;  %v297_v62 = vperm.slane %v289_v59, %v2495_v50  ;;  %v325_v63 = vperm.slane %v319_v56, %v2486_v38  ;;  %v329_v6 = vperm.slane %v321_v46, %v2486_v38 }
 0x139   : > { %v287_v55 = vsel %vm262_vm3, %v286_v58, %v269_v19  ;;  %v298_v9 = vrot.slane %v285_v17, 4  ;;  %v301_v28 = vsel %vm262_vm3, %v285_v17, %v300_v24  ;;  %v607_v10 = vsel %vm262_vm3, 0.0, %v606_v40 }
 0x13a   : > { %v293_v12 = vperm.slane %v287_v55, %v2495_v50  ;;  %v309_v14 = vperm.slane %v301_v28, %v2495_v50  ;;  %v312_v15 = vrot.slane %v297_v62, 4  ;;  %v344_v18 = vrot.slane %v325_v63, 4  ;;  %v246_v16 = vpop.permute.xlu0 %245 }
 0x13b   : > { %v299_v4 = vsel %vm262_vm3, %v298_v9, %v273_v11  ;;  %v356_v21 = vrot.slane %v329_v6, 4  ;;  %v331_v22 = vsel %vm262_vm3, %v330_v48, %v246_v16  ;;  %v332_v19 = vrot.slane %v246_v16, 4 }
 0x13c   : > { %v305_v23 = vperm.slane %v299_v4, %v2495_v50  ;;  %v310_v24 = vrot.slane %v293_v12, 4  ;;  %v2615_v25 = vsel %vm262_vm3, 0.0, %v312_v15  ;;  %v316_v29 = vrot.slane %v309_v14, 4 }
 0x13d   : > { %v374_v27 = vsel %vm262_vm3, %v312_v15, %v293_v12  ;;  %v379_v30 = vrot.slane %v2615_v25, 4  ;;  %v333_v11 = vsel %vm262_vm3, %v2526_v34, %v332_v19  ;;  %v337_v31 = vperm.slane %v331_v22, %v2486_v38 }
 0x13e   : > { %v311_v32 = vsel %vm262_vm3, 0.0, %v310_v24  ;;  %v314_v48 = vrot.slane %v305_v23, 4  ;;  %v317_v37 = vsel %vm262_vm3, 0.0, %v316_v29  ;;  %v2625_v40 = vperm.slane %v374_v27, %v2486_v38 }
 0x13f   : > { %v385_v41 = vsel %vm262_vm3, %v316_v29, %v305_v23  ;;  %v390_v42 = vrot.slane %v317_v37, 4  ;;  %v341_v43 = vperm.slane %v333_v11, %v2486_v38  ;;  %v342_v44 = vrot.slane %v337_v31, 4 }
 0x140   : > { %v345_v45 = vsel %vm262_vm3, %v337_v31, %v344_v18  ;;  %v668_v34 = vsel %vm262_vm3, %v608_v49, %v2571_v26  ;;  %v673_v39 = vrot.slane %v609_v57, 4  ;;  %v689_v46 = vperm.slane %v685_v61, %v2486_v38 }
 0x141   : > { %v343_v51 = vsel %vm262_vm3, %v342_v44, %v325_v63  ;;  %v353_v5 = vperm.slane %v345_v45, %v2495_v50  ;;  %v354_v52 = vrot.slane %v341_v43, 4  ;;  %v357_v54 = vsel %vm262_vm3, %v341_v43, %v356_v21 }
 0x142   : > { %v349_v47 = vperm.slane %v343_v51, %v2495_v50  ;;  %v365_v56 = vperm.slane %v357_v54, %v2495_v50  ;;  %v672_v17 = vperm.slane %v668_v34, %v2486_v38  ;;  %v674_v58 = vsel %vm262_vm3, %v673_v39, %v607_v10  ;;  %v969_v51 = vld [vmem:[#allocation1 + $0x5] ss:$9 sm:$0xff] }
 0x143   : > { %v355_v26 = vsel %vm262_vm3, %v354_v52, %v329_v6  ;;  %v368_v49 = vrot.slane %v353_v5, 4  ;;  %v678_v57 = vperm.slane %v674_v58, %v2486_v38  ;;  %v704_v59 = vrot.slane %v2591_v53, 4 }
 0x144   : > { %v2644_v61 = vperm.slane %v355_v26, %v2495_v50  ;;  %v366_v62 = vrot.slane %v349_v47, 4  ;;  %v2646_v63 = vrot.slane %v365_v56, 4  ;;  %v692_v55 = vrot.slane %v672_v17, 4 }
 0x145   : > { %v369_v9 = vsel %vm262_vm3, 0.0, %v368_v49  ;;  %v428_v28 = vsel %vm262_vm3, %v368_v49, %v349_v47  ;;  %v705_v10 = vsel %vm262_vm3, %v689_v46, %v704_v59  ;;  %v690_v12 = vrot.slane %v678_v57, 4 }
 0x146   : > { %v367_v6 = vsel %vm262_vm3, 0.0, %v366_v62  ;;  %v370_v14 = vrot.slane %v2644_v61, 4  ;;  %v2655_v15 = vsel %vm262_vm3, 0.0, %v2646_v63  ;;  %v433_v18 = vrot.slane %v369_v9, 4 }
 0x147   : > { %v444_v16 = vrot.slane %v2655_v15, 4  ;;  %v693_v4 = vsel %vm262_vm3, %v678_v57, %v692_v55  ;;  %v713_v21 = vperm.slane %v705_v10, %v2495_v50  ;;  %v691_v22 = vsel %vm262_vm3, %v690_v12, %v672_v17 }
 0x148   : > { %v701_v19 = vperm.slane %v693_v4, %v2495_v50  ;;  %v697_v23 = vperm.slane %v691_v22, %v2495_v50  ;;  %v702_v24 = vrot.slane %v689_v46, 4  ;;  %v665_v29 = vsel %vm262_vm3, %v664_v33, %v2547_v60  ;;  %v971_v60 = vld [vmem:[#allocation1 + $0x6] ss:$9 sm:$0xff] }
 0x149   : > { %v718_v27 = vrot.slane %v713_v21, 4  ;;  %v655_v11 = vperm.slane %v2577_v35, %v2495_v50  ;;  %v667_v31 = vsel %vm262_vm3, %v2566_v20, %v666_v36  ;;  %v662_v37 = vrot.slane %v2557_v13, 4 }
 0x14a   : > { %v703_v43 = vsel %vm262_vm3, %v702_v24, %v2591_v53  ;;  %v716_v44 = vrot.slane %v697_v23, 4  ;;  %v720_v45 = vrot.slane %v701_v19, 4  ;;  %v315_v34 = vsel %vm262_vm3, 0.0, %v314_v48 }
 0x14b   : > { %v719_v33 = vsel %vm262_vm3, %v718_v27, %v701_v19  ;;  %v709_v39 = vperm.slane %v703_v43, %v2495_v50  ;;  %v660_v46 = vrot.slane %v655_v11, 4  ;;  %v663_v35 = vsel %vm262_vm3, %v655_v11, %v662_v37 }
 0x14c   : > { %2053 = vmatpush.xpose.msk.msrb.mxu2 %vm142_vm2, %v719_v33  ;;  %v721_v20 = vsel %vm262_vm3, %v713_v21, %v720_v45  ;;  %v380_v36 = vsel %vm262_vm3, %v379_v30, %v311_v32  ;;  %v389_v53 = vperm.slane %v385_v41, %v2486_v38  ;;  %v391_v48 = vsel %vm262_vm3, %v390_v42, %v315_v34 }
 0x14d   : > { %v714_v5 = vrot.slane %v709_v39, 4  ;;  %2057 = vmatpush.xpose.msk.msrb.mxu3 %vm142_vm2, %v721_v20  ;;  %v717_v52 = vsel %vm262_vm3, %v709_v39, %v716_v44  ;;  %v661_v54 = vsel %vm262_vm3, %v660_v46, %v2557_v13  ;;  %v384_v47 = vperm.slane %v380_v36, %v2486_v38 }
 0x14e   : > { %2049 = vmatpush.xpose.msk.msra.mxu1 %vm142_vm2, %v717_v52  ;;  %v395_v25 = vperm.slane %v391_v48, %v2486_v38  ;;  %v398_v30 = vrot.slane %v2625_v40, 4  ;;  %v410_v32 = vrot.slane %v389_v53, 4  ;;  %v2695_v41 = vperm.slane %v971_v60, 0 }
 0x14f   : > { %v715_v42 = vsel %vm262_vm3, %v714_v5, %v697_v23  ;;  %v396_v56 = vrot.slane %v384_v47, 4  ;;  %v2698_v17 = vperm.slane %v969_v51, 0  ;;  %v371_v58 = vsel %vm262_vm3, 0.0, %v370_v14 }
 0x150   : > { %2045 = vmatpush.xpose.msk.msrb.mxu0 %vm142_vm2, %v715_v42  ;;  %2054 = vmatpush.xpose.msk.msrb.mxu2 %vm142_vm2, %v665_v29  ;;  %v399_v13 = vsel %vm262_vm3, %v384_v47, %v398_v30  ;;  %v411_v26 = vsel %vm262_vm3, %v395_v25, %v410_v32  ;;  %v408_v49 = vrot.slane %v395_v25, 4  ;;  %v432_v57 = vperm.slane %v428_v28, %v2486_v38 }
 0x151   : > { %2058 = vmatpush.xpose.msk.msrb.mxu3 %vm142_vm2, %v667_v31  ;;  %v407_v59 = vperm.slane %v399_v13, %v2495_v50  ;;  %v419_v62 = vperm.slane %v411_v26, %v2495_v50  ;;  %v397_v55 = vsel %vm262_vm3, %v396_v56, %v2625_v40  ;;  %v434_v9 = vsel %vm262_vm3, %v433_v18, %v367_v6  ;;  %v967_v31 = vld [vmem:[#allocation1 + $0x4] ss:$9 sm:$0xff] }
 0x152   : > { %2050 = vmatpush.xpose.msk.msra.mxu1 %vm142_vm2, %v663_v35  ;;  %v403_v10 = vperm.slane %v397_v55, %v2495_v50  ;;  %v409_v12 = vsel %vm262_vm3, %v408_v49, %v389_v53  ;;  %v438_v14 = vperm.slane %v434_v9, %v2486_v38  ;;  %v439_v28 = vsel %vm262_vm3, %v2646_v63, %v2644_v61 }
 0x153   : > { %v424_v4 = vrot.slane %v419_v62, 4  ;;  %v426_v21 = vrot.slane %v407_v59, 4  ;;  %v415_v22 = vperm.slane %v409_v12, %v2495_v50  ;;  %v443_v40 = vperm.slane %v439_v28, %v2486_v38  ;;  %v2772_v28 = vpop.f32.mrf.mxu2 }
 0x154   : > { %2046 = vmatpush.xpose.msk.msrb.mxu0 %vm142_vm2, %v661_v54  ;;  %v422_v6 = vrot.slane %v403_v10, 4  ;;  %v445_v18 = vsel %vm262_vm3, %v444_v16, %v371_v58  ;;  %v452_v19 = vrot.slane %v432_v57, 4  ;;  %v450_v23 = vrot.slane %v438_v14, 4  ;;  %v965_v58 = vld [vmem:[#allocation1 + $0x3] ss:$9 sm:$0xff] }
 0x155   : > { %v425_v24 = vsel %vm262_vm3, %v424_v4, %v407_v59  ;;  %v427_v29 = vsel %vm262_vm3, %v419_v62, %v426_v21  ;;  %v420_v61 = vrot.slane %v415_v22, 4  ;;  %v449_v63 = vperm.slane %v445_v18, %v2486_v38 }
 0x156   : > { %2055 = vmatmul.msk.f32.vlgmr.msrb.gmra.mxu2 %vm142_vm2, %v425_v24  ;;  %2059 = vmatmul.msk.f32.vlgmr.msrb.gmra.mxu3 %vm142_vm2, %v427_v29  ;;  %v986_v27 = vmul.f32 %v2695_v41, %v427_v29  ;;  %v423_v11 = vsel %vm262_vm3, %v415_v22, %v422_v6  ;;  %v984_v15 = vmul.f32 %v2698_v17, %v425_v24  ;;  %v464_v16 = vrot.slane %v443_v40, 4 }
 0x157   : > { %v421_v37 = vsel %vm262_vm3, %v420_v61, %v403_v10  ;;  %2051 = vmatmul.msk.f32.vlgmr.msra.gmra.mxu1 %vm142_vm2, %v423_v11  ;;  %v453_v43 = vsel %vm262_vm3, %v438_v14, %v452_v19  ;;  %v451_v44 = vsel %vm262_vm3, %v450_v23, %v432_v57  ;;  %v462_v45 = vrot.slane %v449_v63, 4  ;;  %v2770_v14 = vpop.f32.mrf.mxu3 }
 0x158   : > { %v1006_v34 = vsel %vm142_vm2, %v986_v27, 0.0  ;;  %2047 = vmatmul.msk.f32.vlgmr.msrb.gmra.mxu0 %vm142_vm2, %v421_v37  ;;  %v1000_v33 = vsel %vm142_vm2, %v984_v15, 0.0  ;;  %v461_v39 = vperm.slane %v453_v43, %v2495_v50  ;;  %v465_v46 = vsel %vm262_vm3, %v449_v63, %v464_v16 }
 0x159   : > { %1007 = vadd.xlane.f32.xlu1 %v1006_v34  ;;  %1001 = vadd.xlane.f32.xlu0 %v1000_v33  ;;  %v473_v35 = vperm.slane %v465_v46, %v2495_v50  ;;  %v457_v60 = vperm.slane %v451_v44, %v2495_v50  ;;  %v463_v20 = vsel %vm262_vm3, %v462_v45, %v443_v40  ;;  %v2745_v36 = vperm.slane %v967_v31, 0 }
 0x15a   : > { %v480_v53 = vrot.slane %v461_v39, 4  ;;  %v469_v48 = vperm.slane %v463_v20, %v2495_v50  ;;  %v2762_v57 = vperm.slane %v965_v58, 0 }
 0x15b   : > { %v478_v51 = vrot.slane %v473_v35, 4  ;;  %v476_v5 = vrot.slane %v457_v60, 4  ;;  %v982_v47 = vmul.f32 %v2745_v36, %v423_v11  ;;  %v2776_v22 = vpop.f32.mrf.mxu2 }
 0x15c   : > { %v481_v52 = vsel %vm262_vm3, %v473_v35, %v480_v53  ;;  %v474_v54 = vrot.slane %v469_v48, 4  ;;  %v980_v62 = vmul.f32 %v2762_v57, %v421_v37 }
 0x15d   : > { %v479_v25 = vsel %vm262_vm3, %v478_v51, %v461_v39  ;;  %v987_v30 = vmul.f32 %v2695_v41, %v481_v52  ;;  %v477_v56 = vsel %vm262_vm3, %v469_v48, %v476_v5  ;;  %v994_v26 = vsel %vm142_vm2, %v982_v47, 0.0 }
 0x15e   : > { %2056 = vmatmul.msk.f32.gmra.mxu2 %vm142_vm2, %v479_v25  ;;  %2060 = vmatmul.msk.f32.gmra.mxu3 %vm142_vm2, %v481_v52  ;;  %v475_v32 = vsel %vm262_vm3, %v474_v54, %v457_v60  ;;  %v985_v42 = vmul.f32 %v2698_v17, %v479_v25  ;;  %v983_v59 = vmul.f32 %v2745_v36, %v477_v56  ;;  %v988_v9 = vsel %vm142_vm2, %v980_v62, 0.0 }
 0x15f   : > { %v1009_v13 = vsel %vm142_vm2, %v987_v30, 0.0  ;;  %2052 = vmatmul.msk.f32.gmra.mxu1 %vm142_vm2, %v477_v56  ;;  %v981_v10 = vmul.f32 %v2762_v57, %v475_v32  ;;  %v2774_v21 = vpop.f32.mrf.mxu3 }
 0x160   : > { %2048 = vmatmul.msk.f32.gmra.mxu0 %vm142_vm2, %v475_v32  ;;  %v1003_v49 = vsel %vm142_vm2, %v985_v42, 0.0  ;;  %v997_v55 = vsel %vm142_vm2, %v983_v59, 0.0 }
 0x161   : > { %1010 = vadd.xlane.f32.xlu1 %v1009_v13  ;;  %995 = vadd.xlane.f32.xlu0 %v994_v26  ;;  %v991_v12 = vsel %vm142_vm2, %v981_v10, 0.0 }
 0x162   : > { %1004 = vadd.xlane.f32.xlu2 %v1003_v49 }
 0x169   : > { %998 = vadd.xlane.f32.xlu0 %v997_v55 }
 0x16a   : > { %989 = vadd.xlane.f32.xlu2 %v988_v9 }
 0x172   : > { %992 = vadd.xlane.f32.xlu2 %v991_v12 }
 0x1cc   : > { %v1002_v4 = vpop.xlane.xlu0 %1001  ;;  %v1008_v40 = vpop.xlane.xlu1 %1007 }
 0x1cd   : > { %v1018_v29 = vmul.f32 %v1008_v40, %v2396_v2  ;;  %v1016_v61 = vmul.f32 %v1002_v4, %v2396_v2 }
 0x1d4   : > { %v996_v6 = vpop.xlane.xlu0 %995  ;;  %v1084_v23 = vpop.f32.mrf.mxu1 }
 0x1d5   : > { %v1014_v18 = vmul.f32 %v996_v6, %v2396_v2  ;;  %v1005_v19 = vpop.xlane.xlu2 %1004  ;;  %v1011_v37 = vpop.xlane.xlu1 %1010 }
 0x1d6   : > { %v1049_v45 = vpop.f32.mrf.mxu0  ;;  %v1019_v53 = vmul.f32 %v1011_v37, %v2401_v3  ;;  %v1017_v62 = vmul.f32 %v1005_v19, %v2401_v3 }
 0x1d7   : > { %v1085_v24 = vadd.f32 %v1084_v23, %v1014_v18 }
 0x1d9   : > { %v1162_v63 = vmul.f32 0.17677669, %v1085_v24  ;;  %v1119_v27 = vpop.f32.mrf.mxu2  ;;  %v1154_v11 = vpop.f32.mrf.mxu3 }
 0x1da   : > { %v1120_v15 = vadd.f32 %v1119_v27, %v1016_v61  ;;  %v1155_v16 = vadd.f32 %v1154_v11, %v1018_v29  ;;  %v117_v29 = vld [vmem:[%s2439_s21 + $0x10] sm:$0xff] }
 0x1db   : > { %v2782_v31 = vadd.f32 %v1162_v63, %v2411_v7  ;;  %v140_v63 = vperm.slane %v117_v29, 0 }
 0x1dc   : > { %v1164_v43 = vmul.f32 0.17677669, %v1120_v15  ;;  %v999_v44 = vpop.xlane.xlu0 %998  ;;  %v1166_v34 = vmul.f32 0.17677669, %v1155_v16  ;;  %v1087_v20 = vpop.f32.mrf.mxu1 }
 0x1dd   : > { %v990_v33 = vpop.xlane.xlu2 %989  ;;  %v1015_v39 = vmul.f32 %v999_v44, %v2401_v3  ;;  %v1183_v46 = vsel %vm1176_vm4, %v2782_v31, -inf  ;;  %v2810_v27 = vadd.f32 %v2772_v28, %v140_v63  ;;  %v2813_v11 = vadd.f32 %v2776_v22, %v140_v63 }
 0x1de   : > { %v1172_v35 = vadd.f32 %v1164_v43, %v2411_v7  ;;  %v1012_v60 = vmul.f32 %v990_v33, %v2396_v2  ;;  %1184 = vmax.xlane.f32.xlu2 %v1183_v46  ;;  %v1174_v5 = vadd.f32 %v1166_v34, %v2411_v7  ;;  %v1052_v49 = vpop.f32.mrf.mxu0 }
 0x1df   : > { %v1088_v52 = vadd.f32 %v1087_v20, %v1015_v39  ;;  %v2119_v15 = vpack.i.bf16 %v2810_v27, %v2813_v11 }
 0x1e0   : > { %v1050_v48 = vadd.f32 %v1049_v45, %v1012_v60  ;;  %v1189_v51 = vsel %vm1176_vm4, %v1172_v35, -inf  ;;  %v1195_v56 = vsel %vm1176_vm4, %v1174_v5, -inf }
 0x1e1   : > { %1190 = vmax.xlane.f32.xlu1 %v1189_v51  ;;  %v1157_v54 = vpop.f32.mrf.mxu3  ;;  %v1163_v32 = vmul.f32 0.17677669, %v1088_v52  ;;  %v1122_v59 = vpop.f32.mrf.mxu2 }
 0x1e2   : > { %v1158_v47 = vadd.f32 %v1157_v54, %v1019_v53  ;;  %v1160_v25 = vmul.f32 0.17677669, %v1050_v48  ;;  %v1123_v10 = vadd.f32 %v1122_v59, %v1017_v62 }
 0x1e3   : > { %v1171_v9 = vadd.f32 %v1163_v32, %v2413_v8 }
 0x1e4   : > { %v1168_v30 = vadd.f32 %v1160_v25, %v2411_v7  ;;  %v1167_v58 = vmul.f32 0.17677669, %v1158_v47  ;;  %v1165_v18 = vmul.f32 0.17677669, %v1123_v10  ;;  %v1887_v7 = vld [vmem:[#allocation7 + $0xd0] sm:$0xff] (%p106_p0) }
 0x1e5   : > { %v993_v42 = vpop.xlane.xlu2 %992  ;;  %v1186_v6 = vsel %vm1176_vm4, %v1171_v9, -inf }
 0x1e6   : > { %v1013_v13 = vmul.f32 %v993_v42, %v2401_v3  ;;  %v1177_v26 = vsel %vm1176_vm4, %v1168_v30, -inf  ;;  %1196 = vmax.xlane.f32.xlu2 %v1195_v56  ;;  %v2799_v12 = vadd.f32 %v1167_v58, %v2413_v8  ;;  %v1173_v19 = vadd.f32 %v1165_v18, %v2413_v8 }
 0x1e7   : > { %1178 = vmax.xlane.f32.xlu0 %v1177_v26 }
 0x1e8   : > { %v1053_v55 = vadd.f32 %v1052_v49, %v1013_v13  ;;  %v1198_v23 = vsel %vm1176_vm4, %v2799_v12, -inf  ;;  %v1192_v61 = vsel %vm1176_vm4, %v1173_v19, -inf }
 0x1ea   : > { %v1161_v4 = vmul.f32 0.17677669, %v1053_v55 }
 0x1ec   : > { %v1169_v40 = vadd.f32 %v1161_v4, %v2413_v8  ;;  %v1886_v8 = vld [vmem:[#allocation7 + $0xc8] sm:$0xff] (%p106_p0) }
 0x1ee   : > { %1187 = vmax.xlane.f32.xlu2 %v1186_v6  ;;  %v1180_v24 = vsel %vm1176_vm4, %v1169_v40, -inf }
 0x1ef   : > { %1199 = vmax.xlane.f32.xlu0 %v1198_v23  ;;  %1181 = vmax.xlane.f32.xlu1 %v1180_v24 }
 0x1f7   : > { %1193 = vmax.xlane.f32.xlu1 %v1192_v61 }
 0x203   : > { %2120 = vrot.lane.b32.xlu0 %v2119_v15, %s2316_s4 }
 0x206   : > { %2130 = vrot.lane.b32.xlu2 %v2119_v15, %s2317_s23 }
 0x210   : > { %2125 = vrot.lane.b32.xlu1 %v2119_v15, %s2315_s22 }
 0x251   : > { %v1185_v16 = vpop.xlane.xlu2 %1184 }
 0x252   : > { %v1203_v28 = vsub.f32 %v2782_v31, %v1185_v16 }
 0x254   : > { %v1191_v37 = vpop.xlane.xlu1 %1190  ;;  %v1213_v60 = vmul.f32 1.442695, %v1203_v28 }
 0x255   : > { %v1205_v43 = vsub.f32 %v1172_v35, %v1191_v37 }
 0x257   : > { %v1217_v44 = vmul.f32 1.442695, %v1205_v43 }
 0x259   : > { %2134 = vpow2.f32 %v1217_v44  ;;  %v1197_v45 = vpop.xlane.xlu2 %1196 }
 0x25a   : > { %v1179_v34 = vpop.xlane.xlu0 %1178  ;;  %v1207_v22 = vsub.f32 %v1174_v5, %v1197_v45 }
 0x25b   : > { %v1201_v33 = vsub.f32 %v1168_v30, %v1179_v34 }
 0x25c   : > { %v1221_v39 = vmul.f32 1.442695, %v1207_v22 }
 0x25d   : > { %v1209_v46 = vmul.f32 1.442695, %v1201_v33 }
 0x25e   : > { %2136 = vpow2.f32 %v1221_v39 }
 0x25f   : > { %v2135_v20 = vpop.eup %2134  ;;  %2138 = vpow2.f32 %v1209_v46 }
 0x260   : > { %v2822_v53 = vmul.f32 %v2135_v20, %v2386_v0  ;;  %2140 = vpow2.f32 %v1213_v60 }
 0x261   : > { %v1188_v48 = vpop.xlane.xlu2 %1187 }
 0x262   : > { %v1182_v35 = vpop.xlane.xlu1 %1181  ;;  %v1204_v51 = vsub.f32 %v1171_v9, %v1188_v48  ;;  %v1245_v52 = vsel %vm1176_vm4, %v2822_v53, 0.0  ;;  %v1200_v13 = vpop.xlane.xlu0 %1199 }
 0x263   : > { %v1202_v31 = vsub.f32 %v1169_v40, %v1182_v35  ;;  %1246 = vadd.xlane.f32.xlu0 %v1245_v52  ;;  %v1208_v62 = vsub.f32 %v2799_v12, %v1200_v13  ;;  %v744_v52 = vrot.slane %v2810_v27, 4 }
 0x264   : > { %v2137_v5 = vpop.eup %2136  ;;  %v1215_v30 = vmul.f32 1.442695, %v1204_v51 }
 0x265   : > { %v2139_v54 = vpop.eup %2138  ;;  %v1211_v47 = vmul.f32 1.442695, %v1202_v31  ;;  %v2827_v25 = vmul.f32 %v2137_v5, %v2386_v0  ;;  %v1223_v6 = vmul.f32 1.442695, %v1208_v62  ;;  %v800_v31 = vrot.slane %v2813_v11, 4 }
 0x266   : > { %v2830_v32 = vmul.f32 %v2139_v54, %v2386_v0  ;;  %v2141_v56 = vpop.eup %2140 }
 0x267   : > { %v1251_v42 = vsel %vm1176_vm4, %v2827_v25, 0.0  ;;  %2142 = vpow2.f32 %v1211_v47  ;;  %v2837_v59 = vmul.f32 %v2141_v56, %v2386_v0  ;;  %v1890_v0 = vld [vmem:[#allocation7 + $0xe8] sm:$0xff] (%p106_p0) }
 0x268   : > { %v1233_v58 = vsel %vm1176_vm4, %v2830_v32, 0.0  ;;  %1252 = vadd.xlane.f32.xlu1 %v1251_v42  ;;  %2144 = vpow2.f32 %v1215_v30 }
 0x269   : > { %1234 = vadd.xlane.f32.xlu2 %v1233_v58  ;;  %v1239_v4 = vsel %vm1176_vm4, %v2837_v59, 0.0 }
 0x26a   : > { %v1194_v26 = vpop.xlane.xlu1 %1193 }
 0x26b   : > { %v1206_v49 = vsub.f32 %v1173_v19, %v1194_v26  ;;  %v2131_v19 = vpop.permute.xlu2 %2130 }
 0x26c   : > { %v2133_v16 = vunpack.i.h.bf16 %v2131_v19  ;;  %v2132_v44 = vunpack.i.l.bf16 %v2131_v19 }
 0x26d   : > { %v1219_v55 = vmul.f32 1.442695, %v1206_v49  ;;  %v2143_v9 = vpop.eup %2142 }
 0x26e   : > { %v2841_v10 = vmul.f32 %v2143_v9, %v2391_v1  ;;  %v2145_v40 = vpop.eup %2144  ;;  %v754_v34 = vrot.slane %v2133_v16, 4  ;;  %v810_v33 = vrot.slane %v2132_v44, 4 }
 0x26f   : > { %2146 = vpow2.f32 %v1219_v55  ;;  %v2848_v23 = vmul.f32 %v2145_v40, %v2391_v1 }
 0x270   : > { %1240 = vadd.xlane.f32.xlu1 %v1239_v4  ;;  %v1236_v18 = vsel %vm1176_vm4, %v2841_v10, 0.0  ;;  %2148 = vpow2.f32 %v1223_v6 }
 0x271   : > { %1237 = vadd.xlane.f32.xlu2 %v1236_v18  ;;  %v1242_v63 = vsel %vm1176_vm4, %v2848_v23, 0.0 }
 0x275   : > { %v2147_v12 = vpop.eup %2146  ;;  %v2121_v24 = vpop.permute.xlu0 %2120 }
 0x276   : > { %v2851_v29 = vmul.f32 %v2147_v12, %v2391_v1  ;;  %v2123_v61 = vunpack.i.h.bf16 %v2121_v24  ;;  %v2122_v15 = vunpack.i.l.bf16 %v2121_v24  ;;  %v2149_v43 = vpop.eup %2148 }
 0x277   : > { %v2858_v22 = vmul.f32 %v2149_v43, %v2391_v1  ;;  %v1840_v1 = vld [vmem:[#allocation7] sm:$0xff] (%p106_p0) }
 0x278   : > { %1243 = vadd.xlane.f32.xlu1 %v1242_v63  ;;  %v1248_v37 = vsel %vm1176_vm4, %v2851_v29, 0.0  ;;  %v756_v45 = vrot.slane %v2123_v61, 4  ;;  %v812_v28 = vrot.slane %v2122_v15, 4  ;;  %v755_v39 = vsel %vm262_vm3, %v754_v34, %v2123_v61 }
 0x279   : > { %1249 = vadd.xlane.f32.xlu0 %v1248_v37  ;;  %v811_v60 = vsel %vm262_vm3, %v810_v33, %v2122_v15  ;;  %v1254_v48 = vsel %vm1176_vm4, %v2858_v22, 0.0  ;;  %v761_v35 = vperm.slane %v755_v39, %v2486_v38 }
 0x27a   : > { %v757_v46 = vsel %vm262_vm3, %v2133_v16, %v756_v45  ;;  %v813_v20 = vsel %vm262_vm3, %v2132_v44, %v812_v28  ;;  %v817_v54 = vperm.slane %v811_v60, %v2486_v38 }
 0x27b   : > { %v765_v51 = vperm.slane %v757_v46, %v2486_v38  ;;  %v821_v47 = vperm.slane %v813_v20, %v2486_v38  ;;  %v766_v49 = vrot.slane %v761_v35, 4 }
 0x27c   : > { %v822_v4 = vrot.slane %v817_v54, 4 }
 0x27d   : > { %v778_v62 = vrot.slane %v765_v51, 4  ;;  %v834_v40 = vrot.slane %v821_v47, 4 }
 0x281   : > { %1255 = vadd.xlane.f32.xlu0 %v1254_v48 }
 0x282   : > { %v2126_v5 = vpop.permute.xlu1 %2125 }
 0x283   : > { %v2128_v30 = vunpack.i.h.bf16 %v2126_v5  ;;  %v2127_v42 = vunpack.i.l.bf16 %v2126_v5 }
 0x285   : > { %v742_v56 = vrot.slane %v2128_v30, 4  ;;  %v745_v58 = vsel %vm262_vm3, %v2128_v30, %v744_v52  ;;  %v798_v13 = vrot.slane %v2127_v42, 4  ;;  %v801_v26 = vsel %vm262_vm3, %v2127_v42, %v800_v31 }
 0x286   : > { %v753_v55 = vperm.slane %v745_v58, %v2486_v38  ;;  %v809_v9 = vperm.slane %v801_v26, %v2486_v38 }
 0x287   : > { %v743_v6 = vsel %vm262_vm3, %v742_v56, %v2810_v27  ;;  %v799_v18 = vsel %vm262_vm3, %v798_v13, %v2813_v11 }
 0x288   : > { %v749_v12 = vperm.slane %v743_v6, %v2486_v38  ;;  %v780_v24 = vrot.slane %v753_v55, 4  ;;  %v779_v19 = vsel %vm262_vm3, %v778_v62, %v753_v55  ;;  %v805_v61 = vperm.slane %v799_v18, %v2486_v38 }
 0x289   : > { %v785_v63 = vperm.slane %v779_v19, %v2495_v50  ;;  %v835_v15 = vsel %vm262_vm3, %v834_v40, %v809_v9  ;;  %v836_v16 = vrot.slane %v809_v9, 4 }
 0x28a   : > { %v768_v37 = vrot.slane %v749_v12, 4  ;;  %v767_v43 = vsel %vm262_vm3, %v766_v49, %v749_v12  ;;  %v781_v27 = vsel %vm262_vm3, %v765_v51, %v780_v24  ;;  %v823_v44 = vsel %vm262_vm3, %v822_v4, %v805_v61 }
 0x28b   : > { %v773_v11 = vperm.slane %v767_v43, %v2495_v50  ;;  %v789_v45 = vperm.slane %v781_v27, %v2495_v50  ;;  %v794_v28 = vrot.slane %v785_v63, 4  ;;  %v824_v34 = vrot.slane %v805_v61, 4 }
 0x28c   : > { %v769_v33 = vsel %vm262_vm3, %v761_v35, %v768_v37  ;;  %v829_v39 = vperm.slane %v823_v44, %v2495_v50  ;;  %v837_v46 = vsel %vm262_vm3, %v821_v47, %v836_v16  ;;  %v841_v60 = vperm.slane %v835_v15, %v2495_v50 }
 0x28d   : > { %v777_v20 = vperm.slane %v769_v33, %v2495_v50  ;;  %v790_v48 = vrot.slane %v773_v11, 4  ;;  %v795_v51 = vsel %vm262_vm3, 0.0, %v794_v28  ;;  %v796_v52 = vrot.slane %v789_v45, 4 }
 0x28e   : > { %v825_v31 = vsel %vm262_vm3, %v817_v54, %v824_v34  ;;  %v845_v5 = vperm.slane %v837_v46, %v2495_v50  ;;  %v846_v30 = vrot.slane %v829_v39, 4  ;;  %v850_v42 = vrot.slane %v841_v60, 4 }
 0x28f   : > { %v792_v56 = vrot.slane %v777_v20, 4  ;;  %v797_v35 = vsel %vm262_vm3, 0.0, %v796_v52  ;;  %v833_v58 = vperm.slane %v825_v31, %v2495_v50  ;;  %v791_v47 = vsel %vm262_vm3, 0.0, %v790_v48 }
 0x290   : > { %v851_v13 = vsel %vm262_vm3, 0.0, %v850_v42  ;;  %v852_v26 = vrot.slane %v845_v5, 4  ;;  %v870_v49 = vrot.slane %v797_v35, 4  ;;  %v847_v62 = vsel %vm262_vm3, 0.0, %v846_v30 }
 0x291   : > { %v848_v55 = vrot.slane %v833_v58, 4  ;;  %v793_v54 = vsel %vm262_vm3, 0.0, %v792_v56  ;;  %v854_v9 = vsel %vm262_vm3, %v792_v56, %v773_v11  ;;  %v865_v4 = vsel %vm262_vm3, %v796_v52, %v785_v63 }
 0x292   : > { %v853_v40 = vsel %vm262_vm3, 0.0, %v852_v26  ;;  %v919_v6 = vsel %vm262_vm3, %v852_v26, %v841_v60  ;;  %v858_v18 = vperm.slane %v854_v9, %v2486_v38  ;;  %v859_v12 = vrot.slane %v793_v54, 4 }
 0x293   : > { %v924_v24 = vrot.slane %v853_v40, 4  ;;  %v849_v19 = vsel %vm262_vm3, 0.0, %v848_v55  ;;  %v908_v61 = vsel %vm262_vm3, %v848_v55, %v829_v39  ;;  %v923_v15 = vperm.slane %v919_v6, %v2486_v38 }
 0x294   : > { %v912_v16 = vperm.slane %v908_v61, %v2486_v38  ;;  %v913_v37 = vrot.slane %v849_v19, 4  ;;  %v860_v43 = vsel %vm262_vm3, %v859_v12, %v791_v47  ;;  %v869_v63 = vperm.slane %v865_v4, %v2486_v38 }
 0x295   : > { %v925_v27 = vsel %vm262_vm3, %v924_v24, %v851_v13  ;;  %v944_v44 = vrot.slane %v923_v15, 4  ;;  %v864_v11 = vperm.slane %v860_v43, %v2486_v38  ;;  %v871_v45 = vsel %vm262_vm3, %v870_v49, %v795_v51 }
 0x296   : > { %v914_v28 = vsel %vm262_vm3, %v913_v37, %v847_v62  ;;  %v929_v34 = vperm.slane %v925_v27, %v2486_v38  ;;  %v932_v33 = vrot.slane %v912_v16, 4  ;;  %v875_v39 = vperm.slane %v871_v45, %v2486_v38 }
 0x297   : > { %v918_v46 = vperm.slane %v914_v28, %v2486_v38  ;;  %v878_v60 = vrot.slane %v858_v18, 4  ;;  %v890_v20 = vrot.slane %v869_v63, 4  ;;  %v876_v31 = vrot.slane %v864_v11, 4 }
 0x298   : > { %v945_v48 = vsel %vm262_vm3, %v929_v34, %v944_v44  ;;  %v942_v52 = vrot.slane %v929_v34, 4  ;;  %v888_v5 = vrot.slane %v875_v39, 4 }
 0x299   : > { %v933_v30 = vsel %vm262_vm3, %v918_v46, %v932_v33  ;;  %v953_v51 = vperm.slane %v945_v48, %v2495_v50  ;;  %v930_v42 = vrot.slane %v918_v46, 4  ;;  %v879_v56 = vsel %vm262_vm3, %v864_v11, %v878_v60 }
 0x29a   : > { %v941_v35 = vperm.slane %v933_v30, %v2495_v50  ;;  %v943_v58 = vsel %vm262_vm3, %v942_v52, %v923_v15  ;;  %v887_v47 = vperm.slane %v879_v56, %v2495_v50  ;;  %v891_v13 = vsel %vm262_vm3, %v875_v39, %v890_v20 }
 0x29b   : > { %v958_v26 = vrot.slane %v953_v51, 4  ;;  %v931_v49 = vsel %vm262_vm3, %v930_v42, %v912_v16  ;;  %v949_v62 = vperm.slane %v943_v58, %v2495_v50  ;;  %v899_v55 = vperm.slane %v891_v13, %v2495_v50 }
 0x29c   : > { %v937_v54 = vperm.slane %v931_v49, %v2495_v50  ;;  %v960_v9 = vrot.slane %v941_v35, 4  ;;  %v877_v4 = vsel %vm262_vm3, %v876_v31, %v858_v18  ;;  %v889_v40 = vsel %vm262_vm3, %v888_v5, %v869_v63 }
 0x29d   : > { %v959_v6 = vsel %vm262_vm3, %v958_v26, %v941_v35  ;;  %v954_v12 = vrot.slane %v949_v62, 4  ;;  %v904_v24 = vrot.slane %v899_v55, 4  ;;  %v883_v19 = vperm.slane %v877_v4, %v2495_v50 }
 0x29e   : > { %1399 = vmatpush.msra.mxu2 %v959_v6  ;;  %v961_v61 = vsel %vm262_vm3, %v953_v51, %v960_v9  ;;  %v895_v15 = vperm.slane %v889_v40, %v2495_v50  ;;  %v956_v16 = vrot.slane %v937_v54, 4  ;;  %v906_v37 = vrot.slane %v887_v47, 4 }
 0x29f   : > { %v955_v43 = vsel %vm262_vm3, %v954_v12, %v937_v54  ;;  %v905_v27 = vsel %vm262_vm3, %v904_v24, %v887_v47  ;;  %1428 = vmatpush.msra.mxu3 %v961_v61  ;;  %v902_v18 = vrot.slane %v883_v19, 4 }
 0x2a0   : > { %1341 = vmatpush.msra.mxu0 %v955_v43  ;;  %1400 = vmatpush.msra.mxu2 %v905_v27  ;;  %v900_v63 = vrot.slane %v895_v15, 4  ;;  %v957_v44 = vsel %vm262_vm3, %v949_v62, %v956_v16  ;;  %v907_v11 = vsel %vm262_vm3, %v899_v55, %v906_v37 }
 0x2a1   : > { %1370 = vmatpush.msrb.mxu1 %v957_v44  ;;  %1429 = vmatpush.msra.mxu3 %v907_v11  ;;  %v903_v28 = vsel %vm262_vm3, %v895_v15, %v902_v18 }
 0x2a2   : > { %v901_v45 = vsel %vm262_vm3, %v900_v63, %v883_v19 }
 0x2a3   : > { %1342 = vmatpush.msra.mxu0 %v901_v45  ;;  %1371 = vmatpush.msrb.mxu1 %v903_v28 }
 0x2d6   : > { %v1247_v34 = vpop.xlane.xlu0 %1246 }
 0x2d7   : > { %v1261_v33 = vadd.f32 1e-16, %v1247_v34 }
 0x2d9   : > { %2150 = vrcp.f32 %v1261_v33 }
 0x2db   : > { %v1253_v39 = vpop.xlane.xlu1 %1252 }
 0x2dc   : > { %v1263_v46 = vadd.f32 1e-16, %v1253_v39  ;;  %v1235_v60 = vpop.xlane.xlu2 %1234 }
 0x2dd   : > { %v1257_v20 = vadd.f32 1e-16, %v1235_v60 }
 0x2de   : > { %2152 = vrcp.f32 %v1263_v46 }
 0x2df   : > { %v2151_v48 = vpop.eup %2150  ;;  %2154 = vrcp.f32 %v1257_v20 }
 0x2e0   : > { %v1277_v52 = vmul.f32 %v2151_v48, %v2822_v53 }
 0x2e2   : > { %2065 = vmatmul.msk.f32.vlgmr.msra.gmra.mxu2 %vm1176_vm4, %v1277_v52  ;;  %v1285_v31 = vmul.f32 %v1277_v52, %v2396_v2 }
 0x2e3   : > { %v1241_v5 = vpop.xlane.xlu1 %1240 }
 0x2e4   : > { %v2153_v30 = vpop.eup %2152  ;;  %v1259_v51 = vadd.f32 1e-16, %v1241_v5  ;;  %v1301_v42 = vsel %vm1176_vm4, %v1285_v31, 0.0  ;;  %v1238_v58 = vpop.xlane.xlu2 %1237 }
 0x2e5   : > { %v2155_v56 = vpop.eup %2154  ;;  %v1279_v35 = vmul.f32 %v2153_v30, %v2827_v25  ;;  %1302 = vadd.xlane.f32.xlu0 %v1301_v42  ;;  %v1258_v13 = vadd.f32 1e-16, %v1238_v58 }
 0x2e6   : > { %v1273_v47 = vmul.f32 %v2155_v56, %v2830_v32  ;;  %2156 = vrcp.f32 %v1259_v51 }
 0x2e7   : > { %2067 = vmatmul.msk.f32.vlgmr.msra.gmra.mxu3 %vm1176_vm4, %v1279_v35  ;;  %v1287_v53 = vmul.f32 %v1279_v35, %v2396_v2  ;;  %2158 = vrcp.f32 %v1258_v13 }
 0x2e8   : > { %2061 = vmatmul.msk.f32.vlgmr.msra.gmra.mxu0 %vm1176_vm4, %v1273_v47  ;;  %v1281_v26 = vmul.f32 %v1273_v47, %v2396_v2 }
 0x2e9   : > { %v1307_v49 = vsel %vm1176_vm4, %v1287_v53, 0.0 }
 0x2ea   : > { %1308 = vadd.xlane.f32.xlu1 %v1307_v49  ;;  %v1289_v25 = vsel %vm1176_vm4, %v1281_v26, 0.0 }
 0x2eb   : > { %1290 = vadd.xlane.f32.xlu2 %v1289_v25  ;;  %v1244_v62 = vpop.xlane.xlu1 %1243 }
 0x2ec   : > { %v2157_v55 = vpop.eup %2156  ;;  %v1260_v32 = vadd.f32 1e-16, %v1244_v62  ;;  %v1250_v9 = vpop.xlane.xlu0 %1249 }
 0x2ed   : > { %v1275_v54 = vmul.f32 %v2157_v55, %v2837_v59  ;;  %v2159_v4 = vpop.eup %2158  ;;  %v1262_v40 = vadd.f32 1e-16, %v1250_v9 }
 0x2ee   : > { %2160 = vrcp.f32 %v1260_v32  ;;  %v1274_v6 = vmul.f32 %v2159_v4, %v2841_v10 }
 0x2ef   : > { %2063 = vmatmul.msk.f32.vlgmr.msrb.gmra.mxu1 %vm1176_vm4, %v1275_v54  ;;  %v1283_v12 = vmul.f32 %v1275_v54, %v2396_v2  ;;  %2162 = vrcp.f32 %v1262_v40  ;;  %v1889_v2 = vld [vmem:[#allocation7 + $0xe0] sm:$0xff] (%p106_p0) }
 0x2f0   : > { %2062 = vmatmul.msk.f32.gmra.mxu0 %vm1176_vm4, %v1274_v6  ;;  %v1282_v19 = vmul.f32 %v1274_v6, %v2401_v3 }
 0x2f1   : > { %v1295_v24 = vsel %vm1176_vm4, %v1283_v12, 0.0 }
 0x2f2   : > { %1296 = vadd.xlane.f32.xlu0 %v1295_v24  ;;  %v1292_v59 = vsel %vm1176_vm4, %v1282_v19, 0.0 }
 0x2f3   : > { %1293 = vadd.xlane.f32.xlu1 %v1292_v59 }
 0x2f4   : > { %v2161_v61 = vpop.eup %2160  ;;  %v1256_v15 = vpop.xlane.xlu0 %1255 }
 0x2f5   : > { %v1276_v16 = vmul.f32 %v2161_v61, %v2848_v23  ;;  %v2163_v10 = vpop.eup %2162  ;;  %v1264_v37 = vadd.f32 1e-16, %v1256_v15 }
 0x2f6   : > { %v1278_v43 = vmul.f32 %v2163_v10, %v2851_v29 }
 0x2f7   : > { %2064 = vmatmul.msk.f32.gmra.mxu1 %vm1176_vm4, %v1276_v16  ;;  %2164 = vrcp.f32 %v1264_v37  ;;  %v1284_v11 = vmul.f32 %v1276_v16, %v2401_v3 }
 0x2f8   : > { %2066 = vmatmul.msk.f32.gmra.mxu2 %vm1176_vm4, %v1278_v43  ;;  %v1286_v27 = vmul.f32 %v1278_v43, %v2401_v3 }
 0x2f9   : > { %v1298_v29 = vsel %vm1176_vm4, %v1284_v11, 0.0 }
 0x2fa   : > { %v1304_v18 = vsel %vm1176_vm4, %v1286_v27, 0.0 }
 0x2fb   : > { %1305 = vadd.xlane.f32.xlu2 %v1304_v18 }
 0x2fd   : > { %v2165_v63 = vpop.eup %2164 }
 0x2fe   : > { %v1280_v44 = vmul.f32 %v2165_v63, %v2858_v22 }
 0x300   : > { %2068 = vmatmul.msk.f32.gmra.mxu3 %vm1176_vm4, %v1280_v44  ;;  %v1288_v23 = vmul.f32 %v1280_v44, %v2401_v3  ;;  %v1888_v3 = vld [vmem:[#allocation7 + $0xd8] sm:$0xff] (%p106_p0) }
 0x302   : > { %v1310_v45 = vsel %vm1176_vm4, %v1288_v23, 0.0 }
 0x303   : > { %1311 = vadd.xlane.f32.xlu0 %v1310_v45  ;;  %1299 = vadd.xlane.f32.xlu2 %v1298_v29 }
 0x358   : > { %v1303_v28 = vpop.xlane.xlu0 %1302 }
 0x359   : > { %v1317_v39 = vmul.f32 %v1303_v28, %v2698_v17 }
 0x35d   : > { %v1309_v22 = vpop.xlane.xlu1 %1308 }
 0x35e   : > { %v1291_v34 = vpop.xlane.xlu2 %1290  ;;  %v1319_v5 = vmul.f32 %v1309_v22, %v2695_v41 }
 0x35f   : > { %v1313_v33 = vmul.f32 %v1291_v34, %v2762_v57 }
 0x365   : > { %v1344_v46 = vpop.f32.mrf.mxu0  ;;  %v1402_v20 = vpop.f32.mrf.mxu2 }
 0x366   : > { %v1345_v60 = vadd.f32 %v1344_v46, %v1313_v33  ;;  %v1403_v48 = vadd.f32 %v1402_v20, %v1317_v39  ;;  %v1297_v31 = vpop.xlane.xlu0 %1296  ;;  %v1294_v24 = vpop.xlane.xlu1 %1293 }
 0x367   : > { %v1315_v42 = vmul.f32 %v1297_v31, %v2745_v36  ;;  %v1314_v27 = vmul.f32 %v1294_v24, %v2762_v57 }
 0x368   : > { %v1439_v52 = vrot.slane %v1345_v60, 4  ;;  %v1437_v30 = vrot.slane %v1403_v48, 4 }
 0x36a   : > { %v1431_v51 = vpop.f32.mrf.mxu3  ;;  %v1438_v56 = vsel %vm262_vm3, %v1437_v30, %v1345_v60  ;;  %v1440_v35 = vsel %vm262_vm3, %v1403_v48, %v1439_v52 }
 0x36b   : > { %v1432_v58 = vadd.f32 %v1431_v51, %v1319_v5  ;;  %v1444_v47 = vperm.slane %v1438_v56, %v2486_v38  ;;  %v1448_v49 = vperm.slane %v1440_v35, %v2486_v38 }
 0x36c   : > { %v1373_v13 = vpop.f32.mrf.mxu1 }
 0x36d   : > { %v1449_v53 = vrot.slane %v1432_v58, 4  ;;  %v1374_v26 = vadd.f32 %v1373_v13, %v1315_v42  ;;  %v1463_v32 = vrot.slane %v1444_v47, 4  ;;  %v1475_v4 = vrot.slane %v1448_v49, 4  ;;  %v1347_v16 = vpop.f32.mrf.mxu0 }
 0x36e   : > { %v1306_v55 = vpop.xlane.xlu2 %1305  ;;  %v1348_v45 = vadd.f32 %v1347_v16, %v1314_v27 }
 0x36f   : > { %v1450_v25 = vsel %vm262_vm3, %v1449_v53, %v1374_v26  ;;  %v1451_v62 = vrot.slane %v1374_v26, 4  ;;  %v1318_v60 = vmul.f32 %v1306_v55, %v2698_v17 }
 0x370   : > { %v1456_v54 = vperm.slane %v1450_v25, %v2486_v38  ;;  %v1495_v26 = vrot.slane %v1348_v45, 4 }
 0x371   : > { %v1452_v9 = vsel %vm262_vm3, %v1432_v58, %v1451_v62 }
 0x372   : > { %v1460_v40 = vperm.slane %v1452_v9, %v2486_v38  ;;  %v1461_v6 = vrot.slane %v1456_v54, 4  ;;  %v1464_v12 = vsel %vm262_vm3, %v1456_v54, %v1463_v32 }
 0x373   : > { %v1472_v19 = vperm.slane %v1464_v12, %v2495_v50 }
 0x374   : > { %v1462_v59 = vsel %vm262_vm3, %v1461_v6, %v1444_v47  ;;  %v1473_v61 = vrot.slane %v1460_v40, 4  ;;  %v1476_v15 = vsel %vm262_vm3, %v1460_v40, %v1475_v4  ;;  %v1376_v55 = vpop.f32.mrf.mxu1 }
 0x375   : > { %v1468_v10 = vperm.slane %v1462_v59, %v2495_v50  ;;  %v1484_v37 = vperm.slane %v1476_v15, %v2495_v50  ;;  %v1487_v43 = vrot.slane %v1472_v19, 4 }
 0x376   : > { %v1474_v18 = vsel %vm262_vm3, %v1473_v61, %v1448_v49  ;;  %v1300_v33 = vpop.xlane.xlu2 %1299  ;;  %v1312_v32 = vpop.xlane.xlu0 %1311 }
 0x377   : > { %v1480_v63 = vperm.slane %v1474_v18, %v2495_v50  ;;  %v1485_v44 = vrot.slane %v1468_v10, 4  ;;  %v1488_v11 = vsel %vm262_vm3, 0.0, %v1487_v43  ;;  %v1491_v23 = vrot.slane %v1484_v37, 4 }
 0x378   : > { %v1549_v29 = vsel %vm262_vm3, %v1487_v43, %v1468_v10  ;;  %v1554_v28 = vrot.slane %v1488_v11, 4  ;;  %v1316_v51 = vmul.f32 %v1300_v33, %v2745_v36  ;;  %v1320_v59 = vmul.f32 %v1312_v32, %v2695_v41 }
 0x379   : > { %v1492_v34 = vsel %vm262_vm3, 0.0, %v1491_v23  ;;  %v1486_v39 = vsel %vm262_vm3, 0.0, %v1485_v44  ;;  %v1489_v46 = vrot.slane %v1480_v63, 4  ;;  %v1553_v57 = vperm.slane %v1549_v29, %v2486_v38 }
 0x37a   : > { %v1565_v22 = vrot.slane %v1492_v34, 4  ;;  %v1555_v20 = vsel %vm262_vm3, %v1554_v28, %v1486_v39  ;;  %v1560_v48 = vsel %vm262_vm3, %v1491_v23, %v1480_v63  ;;  %v1377_v4 = vadd.f32 %v1376_v55, %v1316_v51 }
 0x37b   : > { %v1490_v52 = vsel %vm262_vm3, 0.0, %v1489_v46  ;;  %v1559_v31 = vperm.slane %v1555_v20, %v2486_v38  ;;  %v1564_v5 = vperm.slane %v1560_v48, %v2486_v38  ;;  %v1573_v30 = vrot.slane %v1553_v57, 4  ;;  %v1405_v42 = vpop.f32.mrf.mxu2 }
 0x37c   : > { %v1566_v56 = vsel %vm262_vm3, %v1565_v22, %v1490_v52  ;;  %v1406_v35 = vadd.f32 %v1405_v42, %v1318_v60  ;;  %v1507_v27 = vrot.slane %v1377_v4, 4 }
 0x37d   : > { %v1570_v58 = vperm.slane %v1566_v56, %v2486_v38  ;;  %v1574_v17 = vsel %vm262_vm3, %v1559_v31, %v1573_v30  ;;  %v1585_v47 = vrot.slane %v1564_v5, 4  ;;  %v1571_v53 = vrot.slane %v1559_v31, 4 }
 0x37e   : > { %v1582_v13 = vperm.slane %v1574_v17, %v2495_v50  ;;  %v1493_v49 = vrot.slane %v1406_v35, 4  ;;  %v1496_v40 = vsel %vm262_vm3, %v1406_v35, %v1495_v26 }
 0x37f   : > { %v1586_v25 = vsel %vm262_vm3, %v1570_v58, %v1585_v47  ;;  %v1583_v62 = vrot.slane %v1570_v58, 4  ;;  %v1572_v9 = vsel %vm262_vm3, %v1571_v53, %v1553_v57  ;;  %v1504_v10 = vperm.slane %v1496_v40, %v2486_v38 }
 0x380   : > { %v1594_v36 = vperm.slane %v1586_v25, %v2495_v50  ;;  %v1601_v54 = vrot.slane %v1582_v13, 4  ;;  %v1578_v6 = vperm.slane %v1572_v9, %v2495_v50  ;;  %v1494_v61 = vsel %vm262_vm3, %v1493_v49, %v1348_v45 }
 0x381   : > { %v1584_v12 = vsel %vm262_vm3, %v1583_v62, %v1564_v5  ;;  %v1500_v41 = vperm.slane %v1494_v61, %v2486_v38  ;;  %v1531_v29 = vrot.slane %v1504_v10, 4 }
 0x382   : > { %v1602_v24 = vsel %vm262_vm3, %v1594_v36, %v1601_v54  ;;  %v1599_v19 = vrot.slane %v1594_v36, 4  ;;  %v1590_v15 = vperm.slane %v1584_v12, %v2495_v50  ;;  %v1597_v16 = vrot.slane %v1578_v6, 4 }
 0x383   : > { %1675 = vrot.lane.b32.xlu2 %v1602_v24, %s2316_s4  ;;  %v1434_v37 = vpop.f32.mrf.mxu3  ;;  %v1519_v33 = vrot.slane %v1500_v41, 4 }
 0x384   : > { %v1600_v43 = vsel %vm262_vm3, %v1599_v19, %v1582_v13  ;;  %v1435_v18 = vadd.f32 %v1434_v37, %v1320_v59  ;;  %v1595_v63 = vrot.slane %v1590_v15, 4  ;;  %v1598_v44 = vsel %vm262_vm3, %v1590_v15, %v1597_v16 }
 0x385   : > { %1667 = vrot.lane.b32.xlu0 %v1600_v43, %s2315_s22  ;;  %1659 = vrot.lane.b32.xlu1 %v1598_v44, %s2317_s23 }
 0x386   : > { %v1505_v11 = vrot.slane %v1435_v18, 4  ;;  %v1508_v23 = vsel %vm262_vm3, %v1435_v18, %v1507_v27  ;;  %v3034_v45 = vsel %vm262_vm3, %v1595_v63, %v1578_v6 }
 0x387   : > { %v1516_v28 = vperm.slane %v1508_v23, %v2486_v38  ;;  %v118_v23 = vld [vmem:[%s2439_s21 + $0x18] sm:$0xff] }
 0x388   : > { %v1506_v34 = vsel %vm262_vm3, %v1505_v11, %v1377_v4 }
 0x389   : > { %v1512_v39 = vperm.slane %v1506_v34, %v2486_v38  ;;  %v1529_v46 = vrot.slane %v1516_v28, 4  ;;  %v1532_v57 = vsel %vm262_vm3, %v1516_v28, %v1531_v29  ;;  %v141_v29 = vperm.slane %v118_v23, 0  ;;  %v2178_v34 = vld [vmem:[%s2439_s21 + $0x8] sm:$0xff] }
 0x38a   : > { %v1540_v22 = vperm.slane %v1532_v57, %v2495_v50 }
 0x38b   : > { %v1517_v60 = vrot.slane %v1512_v39, 4  ;;  %v1520_v20 = vsel %vm262_vm3, %v1512_v39, %v1519_v33  ;;  %v1530_v48 = vsel %vm262_vm3, %v1529_v46, %v1504_v10  ;;  %v1692_v33 = vperm.slane %v2178_v34, 1  ;;  %v2179_v46 = vld [vmem:[#allocation1] sm:$0xff] }
 0x38c   : > { %v1528_v52 = vperm.slane %v1520_v20, %v2495_v50  ;;  %v1536_v31 = vperm.slane %v1530_v48, %v2495_v50  ;;  %v1547_v5 = vrot.slane %v1540_v22, 4  ;;  %v1689_v57 = vperm.slane %v2179_v46, 1 }
 0x38d   : > { %v1518_v30 = vsel %vm262_vm3, %v1517_v60, %v1500_v41 }
 0x38e   : > { %v1524_v51 = vperm.slane %v1518_v30, %v2495_v50  ;;  %v1543_v42 = vrot.slane %v1528_v52, 4  ;;  %v1545_v56 = vrot.slane %v1536_v31, 4  ;;  %v1548_v35 = vsel %vm262_vm3, 0.0, %v1547_v5 }
 0x38f   : > { %v1614_v58 = vsel %vm262_vm3, %v1547_v5, %v1536_v31  ;;  %v1619_v17 = vrot.slane %v1548_v35, 4 }
 0x390   : > { %v1544_v47 = vsel %vm262_vm3, 0.0, %v1543_v42  ;;  %v1541_v13 = vrot.slane %v1524_v51, 4  ;;  %v1546_v53 = vsel %vm262_vm3, 0.0, %v1545_v56  ;;  %v1603_v26 = vsel %vm262_vm3, %v1543_v42, %v1524_v51 }
 0x391   : > { %v1608_v49 = vrot.slane %v1544_v47, 4  ;;  %v1607_v25 = vperm.slane %v1603_v26, %v2486_v38  ;;  %v1618_v62 = vperm.slane %v1614_v58, %v2486_v38  ;;  %v1620_v55 = vsel %vm262_vm3, %v1619_v17, %v1546_v53 }
 0x392   : > { %v1542_v32 = vsel %vm262_vm3, 0.0, %v1541_v13  ;;  %v1624_v36 = vperm.slane %v1620_v55, %v2486_v38  ;;  %v1751_v13 = vld [vmem:[%s1748_s24 + $0x10] sm:$0xff]  ;;  %v1749_v55 = vld [vmem:[%s1748_s24] sm:$0xff] }
 0x393   : > { %v1609_v54 = vsel %vm262_vm3, %v1608_v49, %v1542_v32  ;;  %v1627_v9 = vrot.slane %v1607_v25, 4  ;;  %v1639_v4 = vrot.slane %v1618_v62, 4  ;;  %v1750_v49 = vld [vmem:[%s1748_s24 + $0x8] sm:$0xff] }
 0x394   : > { %v1613_v40 = vperm.slane %v1609_v54, %v2486_v38  ;;  %v1637_v6 = vrot.slane %v1624_v36, 4 }
 0x395   : > { %v1640_v12 = vsel %vm262_vm3, %v1624_v36, %v1639_v4 }
 0x396   : > { %v1628_v24 = vsel %vm262_vm3, %v1613_v40, %v1627_v9  ;;  %v1648_v19 = vperm.slane %v1640_v12, %v2495_v50  ;;  %v1625_v59 = vrot.slane %v1613_v40, 4  ;;  %v1638_v61 = vsel %vm262_vm3, %v1637_v6, %v1618_v62 }
 0x397   : > { %v1636_v15 = vperm.slane %v1628_v24, %v2495_v50  ;;  %v1644_v16 = vperm.slane %v1638_v61, %v2495_v50 }
 0x398   : > { %v1653_v10 = vrot.slane %v1648_v19, 4  ;;  %v1626_v37 = vsel %vm262_vm3, %v1625_v59, %v1607_v25 }
 0x399   : > { %v1655_v43 = vrot.slane %v1636_v15, 4  ;;  %v1632_v38 = vperm.slane %v1626_v37, %v2495_v50  ;;  %v1649_v27 = vrot.slane %v1644_v16, 4  ;;  %v236_v50 = vadd.f32 %v2770_v14, %v141_v29 }
 0x39a   : > { %v1654_v18 = vsel %vm262_vm3, %v1653_v10, %v1636_v15  ;;  %v3082_v14 = vadd.f32 %v2774_v21, %v141_v29  ;;  %v1752_v21 = vld [vmem:[%s1748_s24 + $0x18] sm:$0xff]  ;;  %v1753_v15 = vperm.slane %v2179_v46, 2 }
 0x39b   : > { %1669 = vrot.lane.b32.xlu1 %v1654_v18, %s2315_s22  ;;  %v1656_v63 = vsel %vm262_vm3, %v1648_v19, %v1655_v43  ;;  %v1651_v44 = vrot.slane %v1632_v38, 4  ;;  %v1650_v41 = vsel %vm262_vm3, %v1649_v27, %v1632_v38  ;;  %v1693_v52 = vmul.f32 %v1692_v33, %v236_v50  ;;  %1766 = vmatpush.xpose.msrb.mxu0 %v1752_v21 }
 0x39c   : > { %1677 = vrot.lane.b32.xlu2 %v1656_v63, %s2316_s4  ;;  %v1694_v58 = vmul.f32 %v1692_v33, %v3082_v14 }
 0x39d   : > { %v1652_v11 = vsel %vm262_vm3, %v1644_v16, %v1651_v44 }
 0x39e   : > { %1661 = vrot.lane.b32.xlu0 %v1652_v11, %s2317_s23 }
 0x39f   : > { %1767 = vmatpush.xpose.msrb.mxu0 %v1751_v13 }
 0x3a3   : > { %1768 = vmatpush.xpose.msrb.mxu0 %v1750_v49 }
 0x3a4   : > { %1824 = vrot.lane.b32.xlu2 %v1753_v15, %s2316_s4 }
 0x3a7   : > { %1769 = vmatpush.xpose.msrb.mxu0 %v1749_v55 }
 0x3ac   : > { %1829 = vrot.lane.b32.xlu2 %v1753_v15, %s2315_s22 }
 0x3dd   : > { %v1676_v60 = vpop.permute.xlu2 %1675 }
 0x3f6   : > { %v1678_v56 = vpop.permute.xlu2 %1677 }
 0x3f7   : > { %v1668_v28 = vpop.permute.xlu0 %1667  ;;  %v1660_v39 = vpop.permute.xlu1 %1659 }
 0x3f8   : > { %v1681_v22 = vsel %vm142_vm2, %v3034_v45, %v1660_v39 }
 0x3f9   : > { %v1684_v20 = vsel %vm1683_vm5, %v1681_v22, %v1668_v28 }
 0x3fa   : > { %v1687_v48 = vsel %vm1686_vm6, %v1684_v20, %v1676_v60  ;;  %v2320_v60 = vmov 16.0  }
 0x3fb   : > { %v1690_v31 = vmul.f32 %v1689_v57, %v1687_v48 }
 0x3fd   : > { %v1695_v5 = vadd.f32 %v1693_v52, %v1690_v31 }
 0x3ff   : > { %1697 = vadd.xlane.f32.xlu0 %v1695_v5 }
 0x40d   : > { %v1670_v51 = vpop.permute.xlu1 %1669 }
 0x410   : > { %v1662_v30 = vpop.permute.xlu0 %1661 }
 0x411   : > { %v1682_v42 = vsel %vm142_vm2, %v1650_v41, %v1662_v30 }
 0x412   : > { %v1685_v45 = vsel %vm1683_vm5, %v1682_v42, %v1670_v51 }
 0x413   : > { %v3087_v35 = vsel %vm1686_vm6, %v1685_v45, %v1678_v56 }
 0x414   : > { %v1691_v17 = vmul.f32 %v1689_v57, %v3087_v35 }
 0x416   : > { %v1696_v47 = vadd.f32 %v1694_v58, %v1691_v17 }
 0x418   : > { %1699 = vadd.xlane.f32.xlu1 %v1696_v47 }
 0x472   : > { %v1698_v53 = vpop.xlane.xlu0 %1697 }
 0x473   : > { %v2069_v26 = vmul.f32 -1.442695, %v1698_v53 }
 0x475   : > { %2166 = vpow2.f32 %v2069_v26 }
 0x47b   : > { %v2167_v25 = vpop.eup %2166 }
 0x47c   : > { %v1707_v62 = vadd.f32 1.0, %v2167_v25 }
 0x47e   : > { %2168 = vrcp.f32 %v1707_v62  ;;  %v1720_v9 = vand.u32 2147483648, %v1707_v62  ;;  %v1718_v40 = vand.u32 2147483647, %v1707_v62  ;;  %vm1714_vm8 = vweird.f32 %v1707_v62 }
 0x480   : > { %v1721_v19 = vor.u32 1.1754944e-38, %v1720_v9  ;;  %vm1719_vm10 = vcmp.eq.f32.partialorder %v1718_v40, 8.507059e+37 }
 0x484   : > { %v2169_v32 = vpop.eup %2168 }
 0x485   : > { %v1710_v36 = vmul.f32 %v2169_v32, %v1707_v62  ;;  %vm1715_vm7 = vweird.f32 %v2169_v32 }
 0x486   : > { %vm1716_vm9 = vmor %vm1714_vm8, %vm1715_vm7 }
 0x487   : > { %v1711_v54 = vsub.f32 1.0, %v1710_v36 }
 0x489   : > { %v1712_v4 = vmul.f32 %v2169_v32, %v1711_v54 }
 0x48b   : > { %v1700_v6 = vpop.xlane.xlu1 %1699  ;;  %v1713_v12 = vadd.f32 %v2169_v32, %v1712_v4 }
 0x48c   : > { %v2070_v24 = vmul.f32 -1.442695, %v1700_v6 }
 0x48d   : > { %v1717_v59 = vsel %vm1716_vm9, %v2169_v32, %v1713_v12 }
 0x48e   : > { %2170 = vpow2.f32 %v2070_v24  ;;  %v1722_v61 = vsel %vm1719_vm10, %v1721_v19, %v1717_v59 }
 0x48f   : > { %v1741_v16 = vsub.f32 1.0, %v1722_v61  ;;  %v1739_v10 = vmul.f32 %v1722_v61, %v236_v50 }
 0x491   : > { %v1743_v37 = vmul.f32 %v1741_v16, %v1687_v48 }
 0x493   : > { %v1745_v43 = vadd.f32 %v1743_v37, %v1739_v10  ;;  %v1825_v37 = vpop.permute.xlu2 %1824 }
 0x494   : > { %v2171_v38 = vpop.eup %2170 }
 0x495   : > { %v1708_v27 = vadd.f32 1.0, %v2171_v38  ;;  %1770 = vmatmul.f32.vlgmr.msrb.gmra.mxu0 %v1745_v43 }
 0x497   : > { %2172 = vrcp.f32 %v1708_v27  ;;  %v1735_v41 = vand.u32 2147483648, %v1708_v27  ;;  %v1733_v23 = vand.u32 2147483647, %v1708_v27  ;;  %vm1729_vm12 = vweird.f32 %v1708_v27 }
 0x498   : > { %2174 = vrcp.f32 %v2320_v60  ;;  %v1841_v60 = vld [vmem:[#allocation7 + $0x8] sm:$0xff] (%p106_p0) }
 0x499   : > { %v1736_v28 = vor.u32 1.1754944e-38, %v1735_v41  ;;  %vm1734_vm14 = vcmp.eq.f32.partialorder %v1733_v23, 8.507059e+37 }
 0x49d   : > { %v2173_v18 = vpop.eup %2172 }
 0x49e   : > { %v1725_v63 = vmul.f32 %v2173_v18, %v1708_v27  ;;  %vm1730_vm11 = vweird.f32 %v2173_v18  ;;  %v2175_v48 = vpop.eup %2174 }
 0x49f   : > { %vm1731_vm13 = vmor %vm1729_vm12, %vm1730_vm11  ;;  %v1789_v30 = vmul.f32 16.0, %v2175_v48  ;;  %vm1793_vm15 = vweird.f32 %v2175_v48 }
 0x4a0   : > { %v1726_v44 = vsub.f32 1.0, %v1725_v63 }
 0x4a1   : > { %v1790_v45 = vsub.f32 1.0, %v1789_v30  ;;  %v1880_v30 = vld [vmem:[#allocation7 + $0x98] sm:$0xff] (%p106_p0) }
 0x4a2   : > { %v1727_v11 = vmul.f32 %v2173_v18, %v1726_v44 }
 0x4a4   : > { %v1728_v29 = vadd.f32 %v2173_v18, %v1727_v11  ;;  %v1830_v11 = vpop.permute.xlu2 %1829 }
 0x4a6   : > { %v1732_v50 = vsel %vm1731_vm13, %v2173_v18, %v1728_v29 }
 0x4a7   : > { %v1737_v34 = vsel %vm1734_vm14, %v1736_v28, %v1732_v50 }
 0x4a8   : > { %v1742_v33 = vsub.f32 1.0, %v1737_v34  ;;  %v1740_v39 = vmul.f32 %v1737_v34, %v3082_v14 }
 0x4aa   : > { %v1744_v46 = vmul.f32 %v1742_v33, %v3087_v35  ;;  %v1791_v35 = vmul.f32 %v2175_v48, %v1790_v45  ;;  %v1935_v45 = vld [vmem:[#allocation7 + $0x178] sm:$0xff] (%p106_p0) }
 0x4ab   :  { %1937 = vmatpush.msra.mxu2 (%p106_p0), %v1935_v45 }
 0x4ac   : > { %v1746_v57 = vadd.f32 %v1744_v46, %v1740_v39  ;;  %v1792_v21 = vadd.f32 %v2175_v48, %v1791_v35  ;;  %v1843_v39 = vld [vmem:[#allocation7 + $0x18] sm:$0xff] (%p106_p0)  ;;  %v1842_v46 = vld [vmem:[#allocation7 + $0x10] sm:$0xff] (%p106_p0)  ;;  %v1932_v35 = vld [vmem:[#allocation7 + $0x160] sm:$0xff] (%p106_p0) }
 0x4ad   :  { %1863 = vmatpush.msra.mxu0 (%p106_p0), %v1843_v39  ;;  %v1965_v39 = vld [vmem:[#allocation7 + $0x190] sm:$0xff] (%p106_p0) }
 0x4ae   : > { %1773 = vmatmul.f32.gmra.mxu0 %v1746_v57  ;;  %v1794_v26 = vsel %vm1793_vm15, %v2175_v48, %v1792_v21  ;;  %v1892_v57 = vld [vmem:[#allocation7 + $0xf8] sm:$0xff] (%p106_p0)  ;;  %v1929_v21 = vld [vmem:[#allocation7 + $0x148] sm:$0xff] (%p106_p0) }
 0x4af   :  { %1894 = vmatpush.msra.mxu1 (%p106_p0), %v1892_v57  ;;  %1864 = vmatpush.msra.mxu0 (%p106_p0), %v1842_v46  ;;  %v1884_v48 = vld [vmem:[#allocation7 + $0xb8] sm:$0xff] (%p106_p0)  ;;  %v1964_v46 = vld [vmem:[#allocation7 + $0x188] sm:$0xff] (%p106_p0)  ;;  %v1963_v57 = vld [vmem:[#allocation7 + $0x180] sm:$0xff] (%p106_p0) }
 0x4b1   :  { %1865 = vmatpush.msra.mxu0 (%p106_p0), %v1841_v60 }
 0x4b3   :  { %1866 = vmatpush.msra.mxu0 (%p106_p0), %v1840_v1 }
 0x512   : > { %v1771_v22 = vpop.f32.mrf.mxu0 }
 0x513   : > { %v1772_v20 = vadd.f32 %v1771_v22, %v1753_v15  ;;  %v1891_v22 = vld [vmem:[#allocation7 + $0xf0] sm:$0xff] (%p106_p0) }
 0x514   :  { %1895 = vmatpush.msra.mxu1 (%p106_p0), %v1891_v22 }
 0x515   : > { %v1777_v31 = vmax.f32 %v1772_v20, 0.0  ;;  %v1885_v20 = vld [vmem:[#allocation7 + $0xc0] sm:$0xff] (%p106_p0) }
 0x516   :  { %1896 = vmatpush.msra.mxu1 (%p106_p0), %v1890_v0 }
 0x517   : > { %v1779_v42 = vsel %vm142_vm2, %v1777_v31, 0.0 }
 0x518   :  { %1897 = vmatpush.msra.mxu1 (%p106_p0), %v1889_v2 }
 0x51a   :  { %1898 = vmatpush.msra.mxu1 (%p106_p0), %v1888_v3 }
 0x51c   :  { %1899 = vmatpush.msra.mxu1 (%p106_p0), %v1887_v7 }
 0x51e   :  { %1900 = vmatpush.msra.mxu1 (%p106_p0), %v1886_v8 }
 0x520   :  { %1901 = vmatpush.msra.mxu1 (%p106_p0), %v1885_v20 }
 0x522   :  { %1902 = vmatpush.msra.mxu1 (%p106_p0), %v1884_v48 }
 0x52b   : > { %v1774_v52 = vpop.f32.mrf.mxu0 }
 0x52c   : > { %v1775_v5 = vadd.f32 %v1774_v52, %v1753_v15  ;;  %v1883_v52 = vld [vmem:[#allocation7 + $0xb0] sm:$0xff] (%p106_p0) }
 0x52d   :  { %1903 = vmatpush.msra.mxu1 (%p106_p0), %v1883_v52 }
 0x52e   : > { %v1778_v51 = vmax.f32 %v1775_v5, 0.0 }
 0x530   : > { %v1780_v56 = vsel %vm142_vm2, %v1778_v51, 0.0 }
 0x531   : > { %v1781_v14 = vadd.f32 %v1780_v56, %v1779_v42  ;;  %v1878_v42 = vld [vmem:[#allocation7 + $0x88] sm:$0xff] (%p106_p0)  ;;  %v1877_v56 = vld [vmem:[#allocation7 + $0x80] sm:$0xff] (%p106_p0) }
 0x533   : > { %v1782_v58 = vrot.slane %v1781_v14, 4 }
 0x535   : > { %v1783_v17 = vadd.f32 %v1782_v58, %v1781_v14  ;;  %v1934_v14 = vld [vmem:[#allocation7 + $0x170] sm:$0xff] (%p106_p0)  ;;  %v1933_v58 = vld [vmem:[#allocation7 + $0x168] sm:$0xff] (%p106_p0) }
 0x536   :  { %1938 = vmatpush.msra.mxu2 (%p106_p0), %v1934_v14 }
 0x537   : > { %v1784_v47 = vrot.slane %v1783_v17, 2 }
 0x538   :  { %1939 = vmatpush.msra.mxu2 (%p106_p0), %v1933_v58 }
 0x539   : > { %v1785_v13 = vadd.f32 %v1784_v47, %v1783_v17  ;;  %v1931_v17 = vld [vmem:[#allocation7 + $0x158] sm:$0xff] (%p106_p0)  ;;  %v1930_v47 = vld [vmem:[#allocation7 + $0x150] sm:$0xff] (%p106_p0) }
 0x53a   :  { %1940 = vmatpush.msra.mxu2 (%p106_p0), %v1932_v35 }
 0x53b   : > { %v1786_v53 = vrot.slane %v1785_v13, 1 }
 0x53c   :  { %1941 = vmatpush.msra.mxu2 (%p106_p0), %v1931_v17 }
 0x53d   : > { %v1787_v49 = vadd.f32 %v1786_v53, %v1785_v13  ;;  %v1928_v13 = vld [vmem:[#allocation7 + $0x140] sm:$0xff] (%p106_p0)  ;;  %v3121_v53 = vld [vmem:[%s3140_s7] sm:$0xf] (%p106_p0) }
 0x53e   :  { %1942 = vmatpush.msra.mxu2 (%p106_p0), %v1930_v47  ;;  %v1936_v22 = vperm.slane (%p106_p0), %v3121_v53, 2  ;;  %v1979_v8 = vperm.slane (%p106_p0), %v3121_v53, 3 }
 0x53f   : > { %v1795_v25 = vmul.f32 %v1794_v26, %v1787_v49  ;;  %v1844_v49 = vperm.slane (%p106_p0), %v3121_v53, 0 }
 0x540   :  { %1943 = vmatpush.msra.mxu2 (%p106_p0), %v1929_v21 }
 0x541   : > { %v1797_v62 = vsub.f32 %v1778_v51, %v1795_v25  ;;  %v1796_v55 = vsub.f32 %v1777_v31, %v1795_v25  ;;  %v1882_v31 = vld [vmem:[#allocation7 + $0xa8] sm:$0xff] (%p106_p0)  ;;  %v1879_v51 = vld [vmem:[#allocation7 + $0x90] sm:$0xff] (%p106_p0) }
 0x542   :  { %1904 = vmatpush.msra.mxu1 (%p106_p0), %v1882_v31  ;;  %1944 = vmatpush.msra.mxu2 (%p106_p0), %v1928_v13  ;;  %v1926_v25 = vld [vmem:[#allocation7 + $0x130] sm:$0xff] (%p106_p0) }
 0x543   : > { %v1799_v32 = vmul.f32 %v1797_v62, %v1797_v62  ;;  %v1798_v36 = vmul.f32 %v1796_v55, %v1796_v55 }
 0x545   : > { %v1801_v54 = vsel %vm142_vm2, %v1799_v32, 0.0  ;;  %v1800_v9 = vsel %vm142_vm2, %v1798_v36, 0.0  ;;  %v1924_v36 = vld [vmem:[#allocation7 + $0x120] sm:$0xff] (%p106_p0) }
 0x546   : > { %v1802_v4 = vadd.f32 %v1801_v54, %v1800_v9  ;;  %v1923_v9 = vld [vmem:[#allocation7 + $0x118] sm:$0xff] (%p106_p0) }
 0x548   : > { %v1803_v40 = vrot.slane %v1802_v4, 4 }
 0x54a   : > { %v1804_v6 = vadd.f32 %v1803_v40, %v1802_v4 }
 0x54c   : > { %v1805_v12 = vrot.slane %v1804_v6, 2 }
 0x54e   : > { %v1806_v24 = vadd.f32 %v1805_v12, %v1804_v6  ;;  %v1922_v12 = vld [vmem:[#allocation7 + $0x110] sm:$0xff] (%p106_p0) }
 0x550   : > { %v1807_v19 = vrot.slane %v1806_v24, 1 }
 0x552   : > { %v1808_v59 = vadd.f32 %v1807_v19, %v1806_v24  ;;  %v1921_v24 = vld [vmem:[#allocation7 + $0x108] sm:$0xff] (%p106_p0)  ;;  %v1920_v19 = vld [vmem:[#allocation7 + $0x100] sm:$0xff] (%p106_p0) }
 0x554   : > { %v1809_v61 = vmul.f32 %v1808_v59, %v1794_v26  ;;  %v1927_v26 = vld [vmem:[#allocation7 + $0x138] sm:$0xff] (%p106_p0) }
 0x555   :  { %1945 = vmatpush.msra.mxu2 (%p106_p0), %v1927_v26  ;;  %v1978_v59 = vld [vmem:[#allocation7 + $0x1f8] sm:$0xff] (%p106_p0) }
 0x556   : > { %v1810_v15 = vadd.f32 1e-05, %v1809_v61  ;;  %v1977_v61 = vld [vmem:[#allocation7 + $0x1f0] sm:$0xff] (%p106_p0)  ;;  %1980 = vmatpush.msra.mxu3 (%p106_p0), %v1978_v59 }
 0x557   :  { %1946 = vmatpush.msra.mxu2 (%p106_p0), %v1926_v25 }
 0x558   : > { %2176 = vrsqrt.f32 %v1810_v15  ;;  %vm1817_vm1 = vweird.f32 %v1810_v15  ;;  %1981 = vmatpush.msra.mxu3 (%p106_p0), %v1977_v61 }
 0x55e   : > { %v2177_v16 = vpop.eup %2176 }
 0x55f   : > { %v1812_v10 = vmul.f32 %v2177_v16, %v1810_v15  ;;  %vm1818_vm0 = vweird.f32 %v2177_v16  ;;  %v1976_v15 = vld [vmem:[#allocation7 + $0x1e8] sm:$0xff] (%p106_p0) }
 0x560   : > { %vm1819_vm3 = vmor %vm1817_vm1, %vm1818_vm0  ;;  %1982 = vmatpush.msra.mxu3 (%p106_p0), %v1976_v15 }
 0x561   : > { %v1813_v43 = vmul.f32 %v2177_v16, %v1812_v10  ;;  %v1974_v10 = vld [vmem:[#allocation7 + $0x1d8] sm:$0xff] (%p106_p0) }
 0x563   : > { %v1814_v38 = vmul.f32 0.5, %v1813_v43  ;;  %v1972_v43 = vld [vmem:[#allocation7 + $0x1c8] sm:$0xff] (%p106_p0) }
 0x565   : > { %v1815_v27 = vsub.f32 1.5, %v1814_v38  ;;  %v1971_v38 = vld [vmem:[#allocation7 + $0x1c0] sm:$0xff] (%p106_p0) }
 0x567   : > { %v1816_v18 = vmul.f32 %v2177_v16, %v1815_v27  ;;  %v1970_v27 = vld [vmem:[#allocation7 + $0x1b8] sm:$0xff] (%p106_p0) }
 0x569   : > { %v1820_v63 = vsel %vm1819_vm3, %v2177_v16, %v1816_v18  ;;  %v1975_v16 = vld [vmem:[#allocation7 + $0x1e0] sm:$0xff] (%p106_p0)  ;;  %v1893_v18 = vperm.slane (%p106_p0), %v3121_v53, 1 }
 0x56a   : > { %v1821_v44 = vmul.f32 %v1820_v63, %v1796_v55  ;;  %v1822_v41 = vmul.f32 %v1820_v63, %v1797_v62  ;;  %v1925_v62 = vld [vmem:[#allocation7 + $0x128] sm:$0xff] (%p106_p0)  ;;  %1983 = vmatpush.msra.mxu3 (%p106_p0), %v1975_v16  ;;  %v1969_v63 = vld [vmem:[#allocation7 + $0x1b0] sm:$0xff] (%p106_p0) }
 0x56b   :  { %1947 = vmatpush.msra.mxu2 (%p106_p0), %v1925_v62 }
 0x56c   : > { %v1827_v23 = vmul.f32 %v1825_v37, %v1821_v44  ;;  %v1828_v29 = vmul.f32 %v1825_v37, %v1822_v41  ;;  %108 = sbr.rel (!%p106_p0) target bundleno = 22 (0x16), region = 93  ;;  %v1973_v37 = vld [vmem:[#allocation7 + $0x1d0] sm:$0xff] (%p106_p0)  ;;  %1984 = vmatpush.msra.mxu3 (%p106_p0), %v1974_v10  ;;  %v1968_v44 = vld [vmem:[#allocation7 + $0x1a8] sm:$0xff] (%p106_p0) }
 0x56d   :  { %1948 = vmatpush.msra.mxu2 (%p106_p0), %v1924_v36 }
 0x56e   : > { %v1832_v28 = vadd.f32 %v1830_v11, %v1827_v23   ;;  %v1833_v50 = vadd.f32 %v1830_v11, %v1828_v29   ;;  %1985 = vmatpush.msra.mxu3 (%p106_p0), %v1973_v37  ;;  %v1967_v23 = vld [vmem:[#allocation7 + $0x1a0] sm:$0xff] (%p106_p0) }
 0x56f   :  { %1949 = vmatpush.msra.mxu2 (%p106_p0), %v1923_v9 }
 0x570   : > { %v3143_v5 = vmov %v1833_v50  ;;  %v3144_v4 = vmov %v1832_v28  ;;  %v1835_v34 = vsel (%p106_p0), %vm142_vm2, %v1832_v28, 0.0  ;;  %v1836_v33 = vsel (%p106_p0), %vm142_vm2, %v1833_v50, 0.0  ;;  %2072 = vmatmul.msk.f32.vlgmr.msra.gmra.mxu0 (%p106_p0), %vm142_vm2, %v1832_v28  ;;  %1986 = vmatpush.msra.mxu3 (%p106_p0), %v1972_v43  ;;  %v1966_v28 = vld [vmem:[#allocation7 + $0x198] sm:$0xff] (%p106_p0) }
 0x571   :  { %1837 = vst [vmem:[%s3142_s9] sm:$0xff] %v1835_v34  ;;  %v1881_v5 = vld [vmem:[#allocation7 + $0xa0] sm:$0xff]  ;;  %1950 = vmatpush.msra.mxu2 %v1922_v12 }
 0x572   :  { %1838 = vst [vmem:[%s3142_s9 + $0x8] sm:$0xff] %v1836_v33  ;;  %1905 = vmatpush.msra.mxu1 %v1881_v5  ;;  %1987 = vmatpush.msra.mxu3 %v1971_v38 }
 0x573   :  { %1951 = vmatpush.msra.mxu2 %v1921_v24 }
 0x574   :  { %1906 = vmatpush.msra.mxu1 %v1880_v30  ;;  %1988 = vmatpush.msra.mxu3 %v1970_v27 }
 0x575   :  { %1952 = vmatpush.msra.mxu2 %v1920_v19 }
 0x576   :  { %1907 = vmatpush.msra.mxu1 %v1879_v51  ;;  %1989 = vmatpush.msra.mxu3 %v1969_v63 }
 0x578   :  { %2073 = vmatmul.msk.f32.gmra.mxu0 %vm142_vm2, %v1833_v50  ;;  %1908 = vmatpush.msra.mxu1 %v1878_v42 }
 0x579   :  { %1990 = vmatpush.msra.mxu3 %v1968_v44 }
 0x57a   :  { %1909 = vmatpush.msra.mxu1 %v1877_v56 }
 0x57b   :  { %1991 = vmatpush.msra.mxu3 %v1967_v23 }
 0x57d   :  { %1992 = vmatpush.msra.mxu3 %v1966_v28 }
 0x57f   :  { %1993 = vmatpush.msra.mxu3 %v1965_v39 }
 0x581   :  { %1994 = vmatpush.msra.mxu3 %v1964_v46 }
 0x583   :  { %1995 = vmatpush.msra.mxu3 %v1963_v57 }
 0x5ed   :  { %v1868_v55 = vpop.f32.mrf.mxu0 }
 0x5ee   :  { %v1869_v32 = vadd.f32 %v1868_v55, %v1844_v49 }
 0x5f0   :  { %v1874_v54 = vmax.f32 %v1869_v32, 0.0 }
 0x5f2   :  { %1910 = vmatmul.f32.vlgmr.msra.gmra.mxu1 %v1874_v54 }
 0x5f5   :  { %v1871_v4 = vpop.f32.mrf.mxu0 }
 0x5f6   :  { %v1872_v40 = vadd.f32 %v1871_v4, %v1844_v49 }
 0x5f8   :  { %v1875_v6 = vmax.f32 %v1872_v40, 0.0 }
 0x5fa   :  { %1913 = vmatmul.f32.gmra.mxu1 %v1875_v6 }
 0x66f   :  { %v1911_v41 = vpop.f32.mrf.mxu1 }
 0x670   :  { %v1912_v11 = vadd.f32 %v1911_v41, %v1893_v18 }
 0x672   :  { %v1917_v29 = vmax.f32 %v1912_v11, 0.0 }
 0x674   :  { %1953 = vmatmul.f32.vlgmr.msra.gmra.mxu2 %v1917_v29 }
 0x677   :  { %v1914_v50 = vpop.f32.mrf.mxu1 }
 0x678   :  { %v1915_v34 = vadd.f32 %v1914_v50, %v1893_v18 }
 0x67a   :  { %v1918_v33 = vmax.f32 %v1915_v34, 0.0 }
 0x67c   :  { %1956 = vmatmul.f32.gmra.mxu2 %v1918_v33 }
 0x6f7   :  { %v1954_v60 = vpop.f32.mrf.mxu2 }
 0x6f8   :  { %v1955_v0 = vadd.f32 %v1954_v60, %v1936_v22 }
 0x6fa   :  { %v1960_v1 = vmax.f32 %v1955_v0, 0.0 }
 0x6fc   :  { %1996 = vmatmul.f32.vlgmr.msra.gmra.mxu3 %v1960_v1 }
 0x6ff   :  { %v1957_v2 = vpop.f32.mrf.mxu2 }
 0x700   :  { %v1958_v3 = vadd.f32 %v1957_v2, %v1936_v22 }
 0x702   :  { %v1961_v7 = vmax.f32 %v1958_v3, 0.0 }
 0x704   :  { %1999 = vmatmul.f32.gmra.mxu3 %v1961_v7 }
 0x77f   :  { %v1997_v20 = vpop.f32.mrf.mxu3 }
 0x780   :  { %v1998_v48 = vadd.f32 %v1997_v20, %v1979_v8 }
 0x782   :  { %2003 = vst [vmem:[%s3141_s8] sm:$0xff] %v1998_v48 }
 0x787   :  { %v2000_v52 = vpop.f32.mrf.mxu3 }
 0x788   :  { %v2001_v31 = vadd.f32 %v2000_v52, %v1979_v8 }
 0x78a   :  { %2004 = vst [vmem:[%s3141_s8 + $0x8] sm:$0xff] %v2001_v31 }
 0x78b   :  { %2013 = vsyncpa [#allocation3], 1 }
 0x78c   :  { %2014 = vsyncpa [#allocation5], 1 }
 0x78d   :  { %2015 = vsyncpa [#allocation8], 1 }

</bundles_post_ra>
